<compile_context>
chip_gen: v6e
topology: v6e:2x2x1
jax: 0.10.0
libtpu: 0.0.40
codegen_flags: <defaults>
</compile_context>

<pallas_src>
import functools

import jax
import jax.numpy as jnp
from jax import lax
from jax.experimental import pallas as pl
from jax.experimental.pallas import tpu as pltpu


# ---------------------------------------------------------------------------
# Kernel: whole sequence in one invocation, wavefront-fused recurrence,
# fully unrolled (T is small and static).
# ---------------------------------------------------------------------------
def _weather_lstm_kernel(x_ref, wih0_ref, b0_ref, wf_ref, b1_ref,
                         fcw_ref, fcb_ref, out_ref, *,
                         hidden_size, seq_len, batch):
    H, T, B = hidden_size, seq_len, batch

    # ---- hoisted layer-0 input projection (time-major, one MXU matmul) ----
    # x_ref is (T*B, I) bf16, time-major: rows t*B:(t+1)*B belong to step t.
    gx = jnp.dot(x_ref[...], wih0_ref[...],
                 preferred_element_type=jnp.float32) + b0_ref[...]   # (T*B, 4H) f32

    wf = wf_ref[...]          # (2H, 8H) bf16, block [whh0T|wih1T ; 0|whh1T]
    b1 = b1_ref[...]          # (1, 4H)  f32

    def gate_combine(gates, c):
        # gates: (B, 4H) f32 in PyTorch i,f,g,o order; one full-width sigmoid,
        # tanh only on the g slice.
        sig = jax.nn.sigmoid(gates)
        i = sig[:, 0 * H:1 * H]
        f = sig[:, 1 * H:2 * H]
        o = sig[:, 3 * H:4 * H]
        g = jnp.tanh(gates[:, 2 * H:3 * H])
        c_new = f * c + i * g
        h_new = o * jnp.tanh(c_new)
        return h_new, c_new

    zeros = jnp.zeros((B, H), jnp.float32)

    # Prologue: layer-0 at t=0 (h0_{-1} = 0 -> recurrent term vanishes).
    h0, c0 = gate_combine(gx[0:B], zeros)
    h1, c1 = zeros, zeros

    # Wavefront: at step t, one fused matmul produces layer-1(t) gates and the
    # recurrent part of layer-0(t+1) gates.  Fully unrolled, static indices.
    for t in range(T):
        lhs = jnp.concatenate([h0, h1], axis=1).astype(jnp.bfloat16)   # (B, 2H)
        fused = jnp.dot(lhs, wf, preferred_element_type=jnp.float32)   # (B, 8H)

        # layer-1, step t
        h1, c1 = gate_combine(fused[:, 4 * H:8 * H] + b1, c1)

        # layer-0, step t+1 (independent of the layer-1 combine above)
        if t + 1 < T:
            h0, c0 = gate_combine(fused[:, 0:4 * H] + gx[(t + 1) * B:(t + 2) * B],
                                  c0)

    # Final Linear on h1_{T-1}.  fcw_ref is (H, 128) zero-padded (first 3 cols
    # real) -> lane-dense unmasked store; wrapper slices [:, :3].
    out_ref[...] = (jnp.dot(h1.astype(jnp.bfloat16), fcw_ref[...],
                            preferred_element_type=jnp.float32) + fcb_ref[...])


def weather_lstm_forward(x, params):
    """x: (B, T, I) float32 (batch_first, like the PyTorch module)."""
    B, T, I = x.shape
    H = params["hidden_size"]
    n_out = params["num_outputs"]
    lane_pad = params["fcwT_pad"].shape[1]

    # Time-major, flattened, bf16 MXU operand (layout plumbing done in XLA,
    # off the kernel's serial chain).
    x_tm = jnp.transpose(x, (1, 0, 2)).reshape(T * B, I).astype(jnp.bfloat16)

    kernel = functools.partial(_weather_lstm_kernel,
                               hidden_size=H, seq_len=T, batch=B)
    vmem = lambda: pl.BlockSpec(memory_space=pltpu.MemorySpace.VMEM)

    out_pad = pl.pallas_call(
        kernel,
        out_shape=jax.ShapeDtypeStruct((B, lane_pad), jnp.float32),
        in_specs=[vmem() for _ in range(7)],
        out_specs=vmem(),
    )(x_tm,
      params["wih0T"], params["b0"],
      params["wfusedT"], params["b1"],
      params["fcwT_pad"], params["fcb_pad"])

    return out_pad[:, :n_out]


# ---------------------------------------------------------------------------
# Pure-JAX f32 reference (for correctness check only)
# ---------------------------------------------------------------------------
def _ref_layer(xs_tm, wihT, whhT, b, H):
    B = xs_tm.shape[1]

    def step(carry, x_t):
        h, c = carry
        gates = x_t @ wihT + h @ whhT + b
        i = jax.nn.sigmoid(gates[:, 0 * H:1 * H])
        f = jax.nn.sigmoid(gates[:, 1 * H:2 * H])
        g = jnp.tanh(gates[:, 2 * H:3 * H])
        o = jax.nn.sigmoid(gates[:, 3 * H:4 * H])
        c = f * c + i * g
        h = o * jnp.tanh(c)
        return (h, c), h

    init = (jnp.zeros((B, H), jnp.float32), jnp.zeros((B, H), jnp.float32))
    _, hs = lax.scan(step, init, xs_tm)
    return hs  # (T, B, H)


def weather_lstm_reference(x, params):
    H = params["hidden_size"]
    xs = jnp.transpose(x, (1, 0, 2))
    h0s = _ref_layer(xs, params["ref_wih0T"], params["ref_whh0T"],
                     params["ref_b0"], H)
    h1s = _ref_layer(h0s, params["ref_wih1T"], params["ref_whh1T"],
                     params["ref_b1"], H)
    return h1s[-1] @ params["ref_fcwT"] + params["ref_fcb"]


# ---------------------------------------------------------------------------
# Deterministic parameter init (PyTorch-style uniform(-1/sqrt(H), 1/sqrt(H)))
# ---------------------------------------------------------------------------
def init_params(key, input_size, hidden_size, num_outputs=3, lane=128):
    H, I = hidden_size, input_size
    k = 1.0 / jnp.sqrt(jnp.float32(H))
    keys = jax.random.split(key, 10)
    u = lambda kk, shape: jax.random.uniform(kk, shape, jnp.float32, -k, k)

    wih0 = u(keys[0], (4 * H, I))
    whh0 = u(keys[1], (4 * H, H))
    bih0 = u(keys[2], (4 * H,))
    bhh0 = u(keys[3], (4 * H,))
    wih1 = u(keys[4], (4 * H, H))
    whh1 = u(keys[5], (4 * H, H))
    bih1 = u(keys[6], (4 * H,))
    bhh1 = u(keys[7], (4 * H,))
    fcw = u(keys[8], (num_outputs, H))
    fcb = u(keys[9], (num_outputs,))

    # Wavefront-fused recurrent weight, (2H, 8H):
    #   rows 0:H  -> [ whh0T | wih1T ]
    #   rows H:2H -> [   0   | whh1T ]
    wfused = jnp.zeros((2 * H, 8 * H), jnp.float32)
    wfused = wfused.at[:H, :4 * H].set(whh0.T)
    wfused = wfused.at[:H, 4 * H:].set(wih1.T)
    wfused = wfused.at[H:, 4 * H:].set(whh1.T)

    fcwT_pad = jnp.zeros((H, lane), jnp.float32).at[:, :num_outputs].set(fcw.T)
    fcb_pad = jnp.zeros((1, lane), jnp.float32).at[:, :num_outputs].set(fcb)

    return dict(
        hidden_size=H,
        num_outputs=num_outputs,
        # kernel-prepped: bf16 MXU operands, f32 biases
        wih0T=wih0.T.astype(jnp.bfloat16),          # (I, 4H)
        b0=(bih0 + bhh0).reshape(1, 4 * H),         # (1, 4H) f32
        wfusedT=wfused.astype(jnp.bfloat16),        # (2H, 8H)
        b1=(bih1 + bhh1).reshape(1, 4 * H),         # (1, 4H) f32
        fcwT_pad=fcwT_pad.astype(jnp.bfloat16),     # (H, 128) lane-padded
        fcb_pad=fcb_pad,                            # (1, 128) f32
        # f32 copies for the pure-JAX reference
        ref_wih0T=wih0.T, ref_whh0T=whh0.T,
        ref_b0=(bih0 + bhh0).reshape(1, 4 * H),
        ref_wih1T=wih1.T, ref_whh1T=whh1.T,
        ref_b1=(bih1 + bhh1).reshape(1, 4 * H),
        ref_fcwT=fcw.T, ref_fcb=fcb.reshape(1, num_outputs),
    )


if __name__ == "__main__":
    B, T = 8, 8          # batch (fills 8 sublane rows), sequence length
    INPUT_SIZE = 8       # weather features per timestep
    HIDDEN = 32          # LSTM hidden size (4H = 128 -> lane-aligned gates)

    key = jax.random.PRNGKey(0)
    kx, kp = jax.random.split(key)
    x = jax.random.normal(kx, (B, T, INPUT_SIZE), jnp.float32)
    params = init_params(kp, INPUT_SIZE, HIDDEN)

    out = jax.block_until_ready(weather_lstm_forward(x, params))
    ref = jax.block_until_ready(weather_lstm_reference(x, params))

    assert out.shape == (B, 3), out.shape
    # bf16 MXU operands in the kernel vs f32 reference -> relaxed tolerance.
    assert jnp.allclose(out, ref, atol=2e-2, rtol=2e-2), (out, ref)

    print("KERNEL_OK")
</pallas_src>

<mosaic_0001>
module attributes {stable_mosaic.version = 11 : i64} {
  func.func @_weather_lstm_kernel(%arg0: memref<64x8xbf16, #tpu.memory_space<vmem>>, %arg1: memref<8x128xbf16, #tpu.memory_space<vmem>>, %arg2: memref<1x128xf32, #tpu.memory_space<vmem>>, %arg3: memref<64x256xbf16, #tpu.memory_space<vmem>>, %arg4: memref<1x128xf32, #tpu.memory_space<vmem>>, %arg5: memref<32x128xbf16, #tpu.memory_space<vmem>>, %arg6: memref<1x128xf32, #tpu.memory_space<vmem>>, %arg7: memref<8x128xf32, #tpu.memory_space<vmem>>) attributes {dimension_semantics = [], scalar_prefetch = 0 : i64, scratch_operands = 0 : i64, tpu.core_type = #tpu.core_type<tc>} {
    %c0 = arith.constant 0 : index
    %c0_0 = arith.constant 0 : index
    %0 = vector.load %arg0[%c0, %c0_0] : memref<64x8xbf16, #tpu.memory_space<vmem>>, vector<64x8xbf16>
    %c0_1 = arith.constant 0 : index
    %c0_2 = arith.constant 0 : index
    %1 = vector.load %arg1[%c0_1, %c0_2] : memref<8x128xbf16, #tpu.memory_space<vmem>>, vector<8x128xbf16>
    %cst = arith.constant dense<0.000000e+00> : vector<64x128xf32>
    %2 = tpu.matmul %0, %1, %cst {dimension_numbers = #tpu.dot_dimension_numbers<[1], [0], [0], [1], [0, 0, 1, 1], [], []>} : vector<64x8xbf16>, vector<8x128xbf16>, vector<64x128xf32> -> vector<64x128xf32>
    %c0_3 = arith.constant 0 : index
    %c0_4 = arith.constant 0 : index
    %3 = vector.load %arg2[%c0_3, %c0_4] : memref<1x128xf32, #tpu.memory_space<vmem>>, vector<1x128xf32>
    %4 = vector.broadcast %3 : vector<1x128xf32> to vector<64x128xf32>
    %5 = arith.addf %2, %4 : vector<64x128xf32>
    %c0_5 = arith.constant 0 : index
    %c0_6 = arith.constant 0 : index
    %6 = vector.load %arg3[%c0_5, %c0_6] : memref<64x256xbf16, #tpu.memory_space<vmem>>, vector<64x256xbf16>
    %c0_7 = arith.constant 0 : index
    %c0_8 = arith.constant 0 : index
    %7 = vector.load %arg4[%c0_7, %c0_8] : memref<1x128xf32, #tpu.memory_space<vmem>>, vector<1x128xf32>
    %cst_9 = arith.constant 0.000000e+00 : f32
    %8 = vector.broadcast %cst_9 : f32 to vector<8x32xf32>
    %9 = vector.extract_strided_slice %5 {offsets = [0, 0], sizes = [8, 128], strides = [1, 1]} : vector<64x128xf32> to vector<8x128xf32>
    %10 = arith.negf %9 : vector<8x128xf32>
    %11 = math.exp %10 : vector<8x128xf32>
    %cst_10 = arith.constant 1.000000e+00 : f32
    %12 = vector.broadcast %cst_10 : f32 to vector<8x128xf32>
    %13 = arith.addf %12, %11 : vector<8x128xf32>
    %14 = arith.divf %12, %13 : vector<8x128xf32>
    %15 = vector.extract_strided_slice %14 {offsets = [0, 0], sizes = [8, 32], strides = [1, 1]} : vector<8x128xf32> to vector<8x32xf32>
    %16 = vector.extract_strided_slice %14 {offsets = [0, 32], sizes = [8, 32], strides = [1, 1]} : vector<8x128xf32> to vector<8x32xf32>
    %17 = vector.extract_strided_slice %14 {offsets = [0, 96], sizes = [8, 32], strides = [1, 1]} : vector<8x128xf32> to vector<8x32xf32>
    %18 = vector.extract_strided_slice %9 {offsets = [0, 64], sizes = [8, 32], strides = [1, 1]} : vector<8x128xf32> to vector<8x32xf32>
    %19 = math.tanh %18 : vector<8x32xf32>
    %20 = arith.mulf %16, %8 : vector<8x32xf32>
    %21 = arith.mulf %15, %19 : vector<8x32xf32>
    %22 = arith.addf %20, %21 : vector<8x32xf32>
    %23 = math.tanh %22 : vector<8x32xf32>
    %24 = arith.mulf %17, %23 : vector<8x32xf32>
    %25 = tpu.concatenate %24, %8 in 1 : vector<8x32xf32>, vector<8x32xf32> -> vector<8x64xf32>
    %26 = arith.truncf %25 : vector<8x64xf32> to vector<8x64xbf16>
    %cst_11 = arith.constant dense<0.000000e+00> : vector<8x256xf32>
    %27 = tpu.matmul %26, %6, %cst_11 {dimension_numbers = #tpu.dot_dimension_numbers<[1], [0], [0], [1], [0, 0, 1, 1], [], []>} : vector<8x64xbf16>, vector<64x256xbf16>, vector<8x256xf32> -> vector<8x256xf32>
    %28 = vector.extract_strided_slice %27 {offsets = [0, 128], sizes = [8, 128], strides = [1, 1]} : vector<8x256xf32> to vector<8x128xf32>
    %29 = vector.broadcast %7 : vector<1x128xf32> to vector<8x128xf32>
    %30 = arith.addf %28, %29 : vector<8x128xf32>
    %31 = arith.negf %30 : vector<8x128xf32>
    %32 = math.exp %31 : vector<8x128xf32>
    %cst_12 = arith.constant 1.000000e+00 : f32
    %33 = vector.broadcast %cst_12 : f32 to vector<8x128xf32>
    %34 = arith.addf %33, %32 : vector<8x128xf32>
    %35 = arith.divf %33, %34 : vector<8x128xf32>
    %36 = vector.extract_strided_slice %35 {offsets = [0, 0], sizes = [8, 32], strides = [1, 1]} : vector<8x128xf32> to vector<8x32xf32>
    %37 = vector.extract_strided_slice %35 {offsets = [0, 32], sizes = [8, 32], strides = [1, 1]} : vector<8x128xf32> to vector<8x32xf32>
    %38 = vector.extract_strided_slice %35 {offsets = [0, 96], sizes = [8, 32], strides = [1, 1]} : vector<8x128xf32> to vector<8x32xf32>
    %39 = vector.extract_strided_slice %30 {offsets = [0, 64], sizes = [8, 32], strides = [1, 1]} : vector<8x128xf32> to vector<8x32xf32>
    %40 = math.tanh %39 : vector<8x32xf32>
    %41 = arith.mulf %37, %8 : vector<8x32xf32>
    %42 = arith.mulf %36, %40 : vector<8x32xf32>
    %43 = arith.addf %41, %42 : vector<8x32xf32>
    %44 = math.tanh %43 : vector<8x32xf32>
    %45 = arith.mulf %38, %44 : vector<8x32xf32>
    %46 = vector.extract_strided_slice %27 {offsets = [0, 0], sizes = [8, 128], strides = [1, 1]} : vector<8x256xf32> to vector<8x128xf32>
    %47 = vector.extract_strided_slice %5 {offsets = [8, 0], sizes = [8, 128], strides = [1, 1]} : vector<64x128xf32> to vector<8x128xf32>
    %48 = arith.addf %46, %47 : vector<8x128xf32>
    %49 = arith.negf %48 : vector<8x128xf32>
    %50 = math.exp %49 : vector<8x128xf32>
    %cst_13 = arith.constant 1.000000e+00 : f32
    %51 = vector.broadcast %cst_13 : f32 to vector<8x128xf32>
    %52 = arith.addf %51, %50 : vector<8x128xf32>
    %53 = arith.divf %51, %52 : vector<8x128xf32>
    %54 = vector.extract_strided_slice %53 {offsets = [0, 0], sizes = [8, 32], strides = [1, 1]} : vector<8x128xf32> to vector<8x32xf32>
    %55 = vector.extract_strided_slice %53 {offsets = [0, 32], sizes = [8, 32], strides = [1, 1]} : vector<8x128xf32> to vector<8x32xf32>
    %56 = vector.extract_strided_slice %53 {offsets = [0, 96], sizes = [8, 32], strides = [1, 1]} : vector<8x128xf32> to vector<8x32xf32>
    %57 = vector.extract_strided_slice %48 {offsets = [0, 64], sizes = [8, 32], strides = [1, 1]} : vector<8x128xf32> to vector<8x32xf32>
    %58 = math.tanh %57 : vector<8x32xf32>
    %59 = arith.mulf %55, %22 : vector<8x32xf32>
    %60 = arith.mulf %54, %58 : vector<8x32xf32>
    %61 = arith.addf %59, %60 : vector<8x32xf32>
    %62 = math.tanh %61 : vector<8x32xf32>
    %63 = arith.mulf %56, %62 : vector<8x32xf32>
    %64 = tpu.concatenate %63, %45 in 1 : vector<8x32xf32>, vector<8x32xf32> -> vector<8x64xf32>
    %65 = arith.truncf %64 : vector<8x64xf32> to vector<8x64xbf16>
    %cst_14 = arith.constant dense<0.000000e+00> : vector<8x256xf32>
    %66 = tpu.matmul %65, %6, %cst_14 {dimension_numbers = #tpu.dot_dimension_numbers<[1], [0], [0], [1], [0, 0, 1, 1], [], []>} : vector<8x64xbf16>, vector<64x256xbf16>, vector<8x256xf32> -> vector<8x256xf32>
    %67 = vector.extract_strided_slice %66 {offsets = [0, 128], sizes = [8, 128], strides = [1, 1]} : vector<8x256xf32> to vector<8x128xf32>
    %68 = vector.broadcast %7 : vector<1x128xf32> to vector<8x128xf32>
    %69 = arith.addf %67, %68 : vector<8x128xf32>
    %70 = arith.negf %69 : vector<8x128xf32>
    %71 = math.exp %70 : vector<8x128xf32>
    %cst_15 = arith.constant 1.000000e+00 : f32
    %72 = vector.broadcast %cst_15 : f32 to vector<8x128xf32>
    %73 = arith.addf %72, %71 : vector<8x128xf32>
    %74 = arith.divf %72, %73 : vector<8x128xf32>
    %75 = vector.extract_strided_slice %74 {offsets = [0, 0], sizes = [8, 32], strides = [1, 1]} : vector<8x128xf32> to vector<8x32xf32>
    %76 = vector.extract_strided_slice %74 {offsets = [0, 32], sizes = [8, 32], strides = [1, 1]} : vector<8x128xf32> to vector<8x32xf32>
    %77 = vector.extract_strided_slice %74 {offsets = [0, 96], sizes = [8, 32], strides = [1, 1]} : vector<8x128xf32> to vector<8x32xf32>
    %78 = vector.extract_strided_slice %69 {offsets = [0, 64], sizes = [8, 32], strides = [1, 1]} : vector<8x128xf32> to vector<8x32xf32>
    %79 = math.tanh %78 : vector<8x32xf32>
    %80 = arith.mulf %76, %43 : vector<8x32xf32>
    %81 = arith.mulf %75, %79 : vector<8x32xf32>
    %82 = arith.addf %80, %81 : vector<8x32xf32>
    %83 = math.tanh %82 : vector<8x32xf32>
    %84 = arith.mulf %77, %83 : vector<8x32xf32>
    %85 = vector.extract_strided_slice %66 {offsets = [0, 0], sizes = [8, 128], strides = [1, 1]} : vector<8x256xf32> to vector<8x128xf32>
    %86 = vector.extract_strided_slice %5 {offsets = [16, 0], sizes = [8, 128], strides = [1, 1]} : vector<64x128xf32> to vector<8x128xf32>
    %87 = arith.addf %85, %86 : vector<8x128xf32>
    %88 = arith.negf %87 : vector<8x128xf32>
    %89 = math.exp %88 : vector<8x128xf32>
    %cst_16 = arith.constant 1.000000e+00 : f32
    %90 = vector.broadcast %cst_16 : f32 to vector<8x128xf32>
    %91 = arith.addf %90, %89 : vector<8x128xf32>
    %92 = arith.divf %90, %91 : vector<8x128xf32>
    %93 = vector.extract_strided_slice %92 {offsets = [0, 0], sizes = [8, 32], strides = [1, 1]} : vector<8x128xf32> to vector<8x32xf32>
    %94 = vector.extract_strided_slice %92 {offsets = [0, 32], sizes = [8, 32], strides = [1, 1]} : vector<8x128xf32> to vector<8x32xf32>
    %95 = vector.extract_strided_slice %92 {offsets = [0, 96], sizes = [8, 32], strides = [1, 1]} : vector<8x128xf32> to vector<8x32xf32>
    %96 = vector.extract_strided_slice %87 {offsets = [0, 64], sizes = [8, 32], strides = [1, 1]} : vector<8x128xf32> to vector<8x32xf32>
    %97 = math.tanh %96 : vector<8x32xf32>
    %98 = arith.mulf %94, %61 : vector<8x32xf32>
    %99 = arith.mulf %93, %97 : vector<8x32xf32>
    %100 = arith.addf %98, %99 : vector<8x32xf32>
    %101 = math.tanh %100 : vector<8x32xf32>
    %102 = arith.mulf %95, %101 : vector<8x32xf32>
    %103 = tpu.concatenate %102, %84 in 1 : vector<8x32xf32>, vector<8x32xf32> -> vector<8x64xf32>
    %104 = arith.truncf %103 : vector<8x64xf32> to vector<8x64xbf16>
    %cst_17 = arith.constant dense<0.000000e+00> : vector<8x256xf32>
    %105 = tpu.matmul %104, %6, %cst_17 {dimension_numbers = #tpu.dot_dimension_numbers<[1], [0], [0], [1], [0, 0, 1, 1], [], []>} : vector<8x64xbf16>, vector<64x256xbf16>, vector<8x256xf32> -> vector<8x256xf32>
    %106 = vector.extract_strided_slice %105 {offsets = [0, 128], sizes = [8, 128], strides = [1, 1]} : vector<8x256xf32> to vector<8x128xf32>
    %107 = vector.broadcast %7 : vector<1x128xf32> to vector<8x128xf32>
    %108 = arith.addf %106, %107 : vector<8x128xf32>
    %109 = arith.negf %108 : vector<8x128xf32>
    %110 = math.exp %109 : vector<8x128xf32>
    %cst_18 = arith.constant 1.000000e+00 : f32
    %111 = vector.broadcast %cst_18 : f32 to vector<8x128xf32>
    %112 = arith.addf %111, %110 : vector<8x128xf32>
    %113 = arith.divf %111, %112 : vector<8x128xf32>
    %114 = vector.extract_strided_slice %113 {offsets = [0, 0], sizes = [8, 32], strides = [1, 1]} : vector<8x128xf32> to vector<8x32xf32>
    %115 = vector.extract_strided_slice %113 {offsets = [0, 32], sizes = [8, 32], strides = [1, 1]} : vector<8x128xf32> to vector<8x32xf32>
    %116 = vector.extract_strided_slice %113 {offsets = [0, 96], sizes = [8, 32], strides = [1, 1]} : vector<8x128xf32> to vector<8x32xf32>
    %117 = vector.extract_strided_slice %108 {offsets = [0, 64], sizes = [8, 32], strides = [1, 1]} : vector<8x128xf32> to vector<8x32xf32>
    %118 = math.tanh %117 : vector<8x32xf32>
    %119 = arith.mulf %115, %82 : vector<8x32xf32>
    %120 = arith.mulf %114, %118 : vector<8x32xf32>
    %121 = arith.addf %119, %120 : vector<8x32xf32>
    %122 = math.tanh %121 : vector<8x32xf32>
    %123 = arith.mulf %116, %122 : vector<8x32xf32>
    %124 = vector.extract_strided_slice %105 {offsets = [0, 0], sizes = [8, 128], strides = [1, 1]} : vector<8x256xf32> to vector<8x128xf32>
    %125 = vector.extract_strided_slice %5 {offsets = [24, 0], sizes = [8, 128], strides = [1, 1]} : vector<64x128xf32> to vector<8x128xf32>
    %126 = arith.addf %124, %125 : vector<8x128xf32>
    %127 = arith.negf %126 : vector<8x128xf32>
    %128 = math.exp %127 : vector<8x128xf32>
    %cst_19 = arith.constant 1.000000e+00 : f32
    %129 = vector.broadcast %cst_19 : f32 to vector<8x128xf32>
    %130 = arith.addf %129, %128 : vector<8x128xf32>
    %131 = arith.divf %129, %130 : vector<8x128xf32>
    %132 = vector.extract_strided_slice %131 {offsets = [0, 0], sizes = [8, 32], strides = [1, 1]} : vector<8x128xf32> to vector<8x32xf32>
    %133 = vector.extract_strided_slice %131 {offsets = [0, 32], sizes = [8, 32], strides = [1, 1]} : vector<8x128xf32> to vector<8x32xf32>
    %134 = vector.extract_strided_slice %131 {offsets = [0, 96], sizes = [8, 32], strides = [1, 1]} : vector<8x128xf32> to vector<8x32xf32>
    %135 = vector.extract_strided_slice %126 {offsets = [0, 64], sizes = [8, 32], strides = [1, 1]} : vector<8x128xf32> to vector<8x32xf32>
    %136 = math.tanh %135 : vector<8x32xf32>
    %137 = arith.mulf %133, %100 : vector<8x32xf32>
    %138 = arith.mulf %132, %136 : vector<8x32xf32>
    %139 = arith.addf %137, %138 : vector<8x32xf32>
    %140 = math.tanh %139 : vector<8x32xf32>
    %141 = arith.mulf %134, %140 : vector<8x32xf32>
    %142 = tpu.concatenate %141, %123 in 1 : vector<8x32xf32>, vector<8x32xf32> -> vector<8x64xf32>
    %143 = arith.truncf %142 : vector<8x64xf32> to vector<8x64xbf16>
    %cst_20 = arith.constant dense<0.000000e+00> : vector<8x256xf32>
    %144 = tpu.matmul %143, %6, %cst_20 {dimension_numbers = #tpu.dot_dimension_numbers<[1], [0], [0], [1], [0, 0, 1, 1], [], []>} : vector<8x64xbf16>, vector<64x256xbf16>, vector<8x256xf32> -> vector<8x256xf32>
    %145 = vector.extract_strided_slice %144 {offsets = [0, 128], sizes = [8, 128], strides = [1, 1]} : vector<8x256xf32> to vector<8x128xf32>
    %146 = vector.broadcast %7 : vector<1x128xf32> to vector<8x128xf32>
    %147 = arith.addf %145, %146 : vector<8x128xf32>
    %148 = arith.negf %147 : vector<8x128xf32>
    %149 = math.exp %148 : vector<8x128xf32>
    %cst_21 = arith.constant 1.000000e+00 : f32
    %150 = vector.broadcast %cst_21 : f32 to vector<8x128xf32>
    %151 = arith.addf %150, %149 : vector<8x128xf32>
    %152 = arith.divf %150, %151 : vector<8x128xf32>
    %153 = vector.extract_strided_slice %152 {offsets = [0, 0], sizes = [8, 32], strides = [1, 1]} : vector<8x128xf32> to vector<8x32xf32>
    %154 = vector.extract_strided_slice %152 {offsets = [0, 32], sizes = [8, 32], strides = [1, 1]} : vector<8x128xf32> to vector<8x32xf32>
    %155 = vector.extract_strided_slice %152 {offsets = [0, 96], sizes = [8, 32], strides = [1, 1]} : vector<8x128xf32> to vector<8x32xf32>
    %156 = vector.extract_strided_slice %147 {offsets = [0, 64], sizes = [8, 32], strides = [1, 1]} : vector<8x128xf32> to vector<8x32xf32>
    %157 = math.tanh %156 : vector<8x32xf32>
    %158 = arith.mulf %154, %121 : vector<8x32xf32>
    %159 = arith.mulf %153, %157 : vector<8x32xf32>
    %160 = arith.addf %158, %159 : vector<8x32xf32>
    %161 = math.tanh %160 : vector<8x32xf32>
    %162 = arith.mulf %155, %161 : vector<8x32xf32>
    %163 = vector.extract_strided_slice %144 {offsets = [0, 0], sizes = [8, 128], strides = [1, 1]} : vector<8x256xf32> to vector<8x128xf32>
    %164 = vector.extract_strided_slice %5 {offsets = [32, 0], sizes = [8, 128], strides = [1, 1]} : vector<64x128xf32> to vector<8x128xf32>
    %165 = arith.addf %163, %164 : vector<8x128xf32>
    %166 = arith.negf %165 : vector<8x128xf32>
    %167 = math.exp %166 : vector<8x128xf32>
    %cst_22 = arith.constant 1.000000e+00 : f32
    %168 = vector.broadcast %cst_22 : f32 to vector<8x128xf32>
    %169 = arith.addf %168, %167 : vector<8x128xf32>
    %170 = arith.divf %168, %169 : vector<8x128xf32>
    %171 = vector.extract_strided_slice %170 {offsets = [0, 0], sizes = [8, 32], strides = [1, 1]} : vector<8x128xf32> to vector<8x32xf32>
    %172 = vector.extract_strided_slice %170 {offsets = [0, 32], sizes = [8, 32], strides = [1, 1]} : vector<8x128xf32> to vector<8x32xf32>
    %173 = vector.extract_strided_slice %170 {offsets = [0, 96], sizes = [8, 32], strides = [1, 1]} : vector<8x128xf32> to vector<8x32xf32>
    %174 = vector.extract_strided_slice %165 {offsets = [0, 64], sizes = [8, 32], strides = [1, 1]} : vector<8x128xf32> to vector<8x32xf32>
    %175 = math.tanh %174 : vector<8x32xf32>
    %176 = arith.mulf %172, %139 : vector<8x32xf32>
    %177 = arith.mulf %171, %175 : vector<8x32xf32>
    %178 = arith.addf %176, %177 : vector<8x32xf32>
    %179 = math.tanh %178 : vector<8x32xf32>
    %180 = arith.mulf %173, %179 : vector<8x32xf32>
    %181 = tpu.concatenate %180, %162 in 1 : vector<8x32xf32>, vector<8x32xf32> -> vector<8x64xf32>
    %182 = arith.truncf %181 : vector<8x64xf32> to vector<8x64xbf16>
    %cst_23 = arith.constant dense<0.000000e+00> : vector<8x256xf32>
    %183 = tpu.matmul %182, %6, %cst_23 {dimension_numbers = #tpu.dot_dimension_numbers<[1], [0], [0], [1], [0, 0, 1, 1], [], []>} : vector<8x64xbf16>, vector<64x256xbf16>, vector<8x256xf32> -> vector<8x256xf32>
    %184 = vector.extract_strided_slice %183 {offsets = [0, 128], sizes = [8, 128], strides = [1, 1]} : vector<8x256xf32> to vector<8x128xf32>
    %185 = vector.broadcast %7 : vector<1x128xf32> to vector<8x128xf32>
    %186 = arith.addf %184, %185 : vector<8x128xf32>
    %187 = arith.negf %186 : vector<8x128xf32>
    %188 = math.exp %187 : vector<8x128xf32>
    %cst_24 = arith.constant 1.000000e+00 : f32
    %189 = vector.broadcast %cst_24 : f32 to vector<8x128xf32>
    %190 = arith.addf %189, %188 : vector<8x128xf32>
    %191 = arith.divf %189, %190 : vector<8x128xf32>
    %192 = vector.extract_strided_slice %191 {offsets = [0, 0], sizes = [8, 32], strides = [1, 1]} : vector<8x128xf32> to vector<8x32xf32>
    %193 = vector.extract_strided_slice %191 {offsets = [0, 32], sizes = [8, 32], strides = [1, 1]} : vector<8x128xf32> to vector<8x32xf32>
    %194 = vector.extract_strided_slice %191 {offsets = [0, 96], sizes = [8, 32], strides = [1, 1]} : vector<8x128xf32> to vector<8x32xf32>
    %195 = vector.extract_strided_slice %186 {offsets = [0, 64], sizes = [8, 32], strides = [1, 1]} : vector<8x128xf32> to vector<8x32xf32>
    %196 = math.tanh %195 : vector<8x32xf32>
    %197 = arith.mulf %193, %160 : vector<8x32xf32>
    %198 = arith.mulf %192, %196 : vector<8x32xf32>
    %199 = arith.addf %197, %198 : vector<8x32xf32>
    %200 = math.tanh %199 : vector<8x32xf32>
    %201 = arith.mulf %194, %200 : vector<8x32xf32>
    %202 = vector.extract_strided_slice %183 {offsets = [0, 0], sizes = [8, 128], strides = [1, 1]} : vector<8x256xf32> to vector<8x128xf32>
    %203 = vector.extract_strided_slice %5 {offsets = [40, 0], sizes = [8, 128], strides = [1, 1]} : vector<64x128xf32> to vector<8x128xf32>
    %204 = arith.addf %202, %203 : vector<8x128xf32>
    %205 = arith.negf %204 : vector<8x128xf32>
    %206 = math.exp %205 : vector<8x128xf32>
    %cst_25 = arith.constant 1.000000e+00 : f32
    %207 = vector.broadcast %cst_25 : f32 to vector<8x128xf32>
    %208 = arith.addf %207, %206 : vector<8x128xf32>
    %209 = arith.divf %207, %208 : vector<8x128xf32>
    %210 = vector.extract_strided_slice %209 {offsets = [0, 0], sizes = [8, 32], strides = [1, 1]} : vector<8x128xf32> to vector<8x32xf32>
    %211 = vector.extract_strided_slice %209 {offsets = [0, 32], sizes = [8, 32], strides = [1, 1]} : vector<8x128xf32> to vector<8x32xf32>
    %212 = vector.extract_strided_slice %209 {offsets = [0, 96], sizes = [8, 32], strides = [1, 1]} : vector<8x128xf32> to vector<8x32xf32>
    %213 = vector.extract_strided_slice %204 {offsets = [0, 64], sizes = [8, 32], strides = [1, 1]} : vector<8x128xf32> to vector<8x32xf32>
    %214 = math.tanh %213 : vector<8x32xf32>
    %215 = arith.mulf %211, %178 : vector<8x32xf32>
    %216 = arith.mulf %210, %214 : vector<8x32xf32>
    %217 = arith.addf %215, %216 : vector<8x32xf32>
    %218 = math.tanh %217 : vector<8x32xf32>
    %219 = arith.mulf %212, %218 : vector<8x32xf32>
    %220 = tpu.concatenate %219, %201 in 1 : vector<8x32xf32>, vector<8x32xf32> -> vector<8x64xf32>
    %221 = arith.truncf %220 : vector<8x64xf32> to vector<8x64xbf16>
    %cst_26 = arith.constant dense<0.000000e+00> : vector<8x256xf32>
    %222 = tpu.matmul %221, %6, %cst_26 {dimension_numbers = #tpu.dot_dimension_numbers<[1], [0], [0], [1], [0, 0, 1, 1], [], []>} : vector<8x64xbf16>, vector<64x256xbf16>, vector<8x256xf32> -> vector<8x256xf32>
    %223 = vector.extract_strided_slice %222 {offsets = [0, 128], sizes = [8, 128], strides = [1, 1]} : vector<8x256xf32> to vector<8x128xf32>
    %224 = vector.broadcast %7 : vector<1x128xf32> to vector<8x128xf32>
    %225 = arith.addf %223, %224 : vector<8x128xf32>
    %226 = arith.negf %225 : vector<8x128xf32>
    %227 = math.exp %226 : vector<8x128xf32>
    %cst_27 = arith.constant 1.000000e+00 : f32
    %228 = vector.broadcast %cst_27 : f32 to vector<8x128xf32>
    %229 = arith.addf %228, %227 : vector<8x128xf32>
    %230 = arith.divf %228, %229 : vector<8x128xf32>
    %231 = vector.extract_strided_slice %230 {offsets = [0, 0], sizes = [8, 32], strides = [1, 1]} : vector<8x128xf32> to vector<8x32xf32>
    %232 = vector.extract_strided_slice %230 {offsets = [0, 32], sizes = [8, 32], strides = [1, 1]} : vector<8x128xf32> to vector<8x32xf32>
    %233 = vector.extract_strided_slice %230 {offsets = [0, 96], sizes = [8, 32], strides = [1, 1]} : vector<8x128xf32> to vector<8x32xf32>
    %234 = vector.extract_strided_slice %225 {offsets = [0, 64], sizes = [8, 32], strides = [1, 1]} : vector<8x128xf32> to vector<8x32xf32>
    %235 = math.tanh %234 : vector<8x32xf32>
    %236 = arith.mulf %232, %199 : vector<8x32xf32>
    %237 = arith.mulf %231, %235 : vector<8x32xf32>
    %238 = arith.addf %236, %237 : vector<8x32xf32>
    %239 = math.tanh %238 : vector<8x32xf32>
    %240 = arith.mulf %233, %239 : vector<8x32xf32>
    %241 = vector.extract_strided_slice %222 {offsets = [0, 0], sizes = [8, 128], strides = [1, 1]} : vector<8x256xf32> to vector<8x128xf32>
    %242 = vector.extract_strided_slice %5 {offsets = [48, 0], sizes = [8, 128], strides = [1, 1]} : vector<64x128xf32> to vector<8x128xf32>
    %243 = arith.addf %241, %242 : vector<8x128xf32>
    %244 = arith.negf %243 : vector<8x128xf32>
    %245 = math.exp %244 : vector<8x128xf32>
    %cst_28 = arith.constant 1.000000e+00 : f32
    %246 = vector.broadcast %cst_28 : f32 to vector<8x128xf32>
    %247 = arith.addf %246, %245 : vector<8x128xf32>
    %248 = arith.divf %246, %247 : vector<8x128xf32>
    %249 = vector.extract_strided_slice %248 {offsets = [0, 0], sizes = [8, 32], strides = [1, 1]} : vector<8x128xf32> to vector<8x32xf32>
    %250 = vector.extract_strided_slice %248 {offsets = [0, 32], sizes = [8, 32], strides = [1, 1]} : vector<8x128xf32> to vector<8x32xf32>
    %251 = vector.extract_strided_slice %248 {offsets = [0, 96], sizes = [8, 32], strides = [1, 1]} : vector<8x128xf32> to vector<8x32xf32>
    %252 = vector.extract_strided_slice %243 {offsets = [0, 64], sizes = [8, 32], strides = [1, 1]} : vector<8x128xf32> to vector<8x32xf32>
    %253 = math.tanh %252 : vector<8x32xf32>
    %254 = arith.mulf %250, %217 : vector<8x32xf32>
    %255 = arith.mulf %249, %253 : vector<8x32xf32>
    %256 = arith.addf %254, %255 : vector<8x32xf32>
    %257 = math.tanh %256 : vector<8x32xf32>
    %258 = arith.mulf %251, %257 : vector<8x32xf32>
    %259 = tpu.concatenate %258, %240 in 1 : vector<8x32xf32>, vector<8x32xf32> -> vector<8x64xf32>
    %260 = arith.truncf %259 : vector<8x64xf32> to vector<8x64xbf16>
    %cst_29 = arith.constant dense<0.000000e+00> : vector<8x256xf32>
    %261 = tpu.matmul %260, %6, %cst_29 {dimension_numbers = #tpu.dot_dimension_numbers<[1], [0], [0], [1], [0, 0, 1, 1], [], []>} : vector<8x64xbf16>, vector<64x256xbf16>, vector<8x256xf32> -> vector<8x256xf32>
    %262 = vector.extract_strided_slice %261 {offsets = [0, 128], sizes = [8, 128], strides = [1, 1]} : vector<8x256xf32> to vector<8x128xf32>
    %263 = vector.broadcast %7 : vector<1x128xf32> to vector<8x128xf32>
    %264 = arith.addf %262, %263 : vector<8x128xf32>
    %265 = arith.negf %264 : vector<8x128xf32>
    %266 = math.exp %265 : vector<8x128xf32>
    %cst_30 = arith.constant 1.000000e+00 : f32
    %267 = vector.broadcast %cst_30 : f32 to vector<8x128xf32>
    %268 = arith.addf %267, %266 : vector<8x128xf32>
    %269 = arith.divf %267, %268 : vector<8x128xf32>
    %270 = vector.extract_strided_slice %269 {offsets = [0, 0], sizes = [8, 32], strides = [1, 1]} : vector<8x128xf32> to vector<8x32xf32>
    %271 = vector.extract_strided_slice %269 {offsets = [0, 32], sizes = [8, 32], strides = [1, 1]} : vector<8x128xf32> to vector<8x32xf32>
    %272 = vector.extract_strided_slice %269 {offsets = [0, 96], sizes = [8, 32], strides = [1, 1]} : vector<8x128xf32> to vector<8x32xf32>
    %273 = vector.extract_strided_slice %264 {offsets = [0, 64], sizes = [8, 32], strides = [1, 1]} : vector<8x128xf32> to vector<8x32xf32>
    %274 = math.tanh %273 : vector<8x32xf32>
    %275 = arith.mulf %271, %238 : vector<8x32xf32>
    %276 = arith.mulf %270, %274 : vector<8x32xf32>
    %277 = arith.addf %275, %276 : vector<8x32xf32>
    %278 = math.tanh %277 : vector<8x32xf32>
    %279 = arith.mulf %272, %278 : vector<8x32xf32>
    %280 = vector.extract_strided_slice %261 {offsets = [0, 0], sizes = [8, 128], strides = [1, 1]} : vector<8x256xf32> to vector<8x128xf32>
    %281 = vector.extract_strided_slice %5 {offsets = [56, 0], sizes = [8, 128], strides = [1, 1]} : vector<64x128xf32> to vector<8x128xf32>
    %282 = arith.addf %280, %281 : vector<8x128xf32>
    %283 = arith.negf %282 : vector<8x128xf32>
    %284 = math.exp %283 : vector<8x128xf32>
    %cst_31 = arith.constant 1.000000e+00 : f32
    %285 = vector.broadcast %cst_31 : f32 to vector<8x128xf32>
    %286 = arith.addf %285, %284 : vector<8x128xf32>
    %287 = arith.divf %285, %286 : vector<8x128xf32>
    %288 = vector.extract_strided_slice %287 {offsets = [0, 0], sizes = [8, 32], strides = [1, 1]} : vector<8x128xf32> to vector<8x32xf32>
    %289 = vector.extract_strided_slice %287 {offsets = [0, 32], sizes = [8, 32], strides = [1, 1]} : vector<8x128xf32> to vector<8x32xf32>
    %290 = vector.extract_strided_slice %287 {offsets = [0, 96], sizes = [8, 32], strides = [1, 1]} : vector<8x128xf32> to vector<8x32xf32>
    %291 = vector.extract_strided_slice %282 {offsets = [0, 64], sizes = [8, 32], strides = [1, 1]} : vector<8x128xf32> to vector<8x32xf32>
    %292 = math.tanh %291 : vector<8x32xf32>
    %293 = arith.mulf %289, %256 : vector<8x32xf32>
    %294 = arith.mulf %288, %292 : vector<8x32xf32>
    %295 = arith.addf %293, %294 : vector<8x32xf32>
    %296 = math.tanh %295 : vector<8x32xf32>
    %297 = arith.mulf %290, %296 : vector<8x32xf32>
    %298 = tpu.concatenate %297, %279 in 1 : vector<8x32xf32>, vector<8x32xf32> -> vector<8x64xf32>
    %299 = arith.truncf %298 : vector<8x64xf32> to vector<8x64xbf16>
    %cst_32 = arith.constant dense<0.000000e+00> : vector<8x256xf32>
    %300 = tpu.matmul %299, %6, %cst_32 {dimension_numbers = #tpu.dot_dimension_numbers<[1], [0], [0], [1], [0, 0, 1, 1], [], []>} : vector<8x64xbf16>, vector<64x256xbf16>, vector<8x256xf32> -> vector<8x256xf32>
    %301 = vector.extract_strided_slice %300 {offsets = [0, 128], sizes = [8, 128], strides = [1, 1]} : vector<8x256xf32> to vector<8x128xf32>
    %302 = vector.broadcast %7 : vector<1x128xf32> to vector<8x128xf32>
    %303 = arith.addf %301, %302 : vector<8x128xf32>
    %304 = arith.negf %303 : vector<8x128xf32>
    %305 = math.exp %304 : vector<8x128xf32>
    %cst_33 = arith.constant 1.000000e+00 : f32
    %306 = vector.broadcast %cst_33 : f32 to vector<8x128xf32>
    %307 = arith.addf %306, %305 : vector<8x128xf32>
    %308 = arith.divf %306, %307 : vector<8x128xf32>
    %309 = vector.extract_strided_slice %308 {offsets = [0, 0], sizes = [8, 32], strides = [1, 1]} : vector<8x128xf32> to vector<8x32xf32>
    %310 = vector.extract_strided_slice %308 {offsets = [0, 32], sizes = [8, 32], strides = [1, 1]} : vector<8x128xf32> to vector<8x32xf32>
    %311 = vector.extract_strided_slice %308 {offsets = [0, 96], sizes = [8, 32], strides = [1, 1]} : vector<8x128xf32> to vector<8x32xf32>
    %312 = vector.extract_strided_slice %303 {offsets = [0, 64], sizes = [8, 32], strides = [1, 1]} : vector<8x128xf32> to vector<8x32xf32>
    %313 = math.tanh %312 : vector<8x32xf32>
    %314 = arith.mulf %310, %277 : vector<8x32xf32>
    %315 = arith.mulf %309, %313 : vector<8x32xf32>
    %316 = arith.addf %314, %315 : vector<8x32xf32>
    %317 = math.tanh %316 : vector<8x32xf32>
    %318 = arith.mulf %311, %317 : vector<8x32xf32>
    %319 = arith.truncf %318 : vector<8x32xf32> to vector<8x32xbf16>
    %c0_34 = arith.constant 0 : index
    %c0_35 = arith.constant 0 : index
    %320 = vector.load %arg5[%c0_34, %c0_35] : memref<32x128xbf16, #tpu.memory_space<vmem>>, vector<32x128xbf16>
    %cst_36 = arith.constant dense<0.000000e+00> : vector<8x128xf32>
    %321 = tpu.matmul %319, %320, %cst_36 {dimension_numbers = #tpu.dot_dimension_numbers<[1], [0], [0], [1], [0, 0, 1, 1], [], []>} : vector<8x32xbf16>, vector<32x128xbf16>, vector<8x128xf32> -> vector<8x128xf32>
    %c0_37 = arith.constant 0 : index
    %c0_38 = arith.constant 0 : index
    %322 = vector.load %arg6[%c0_37, %c0_38] : memref<1x128xf32, #tpu.memory_space<vmem>>, vector<1x128xf32>
    %323 = vector.broadcast %322 : vector<1x128xf32> to vector<8x128xf32>
    %324 = arith.addf %321, %323 : vector<8x128xf32>
    %c0_39 = arith.constant 0 : index
    %c0_40 = arith.constant 0 : index
    %325 = vector.load %arg7[%c0_39, %c0_40] : memref<8x128xf32, #tpu.memory_space<vmem>>, vector<8x128xf32>
    tpu.vector_store %arg7[%c0_39, %c0_40], %324 {strides = array<i32>} : memref<8x128xf32, #tpu.memory_space<vmem>>, vector<8x128xf32>,
    return
  }
}

</mosaic_0001>

<bundles_post_ra>
// kernel: tpu_custom_call.1
= control target key start
LH: loop header
LB: loop body
LE: loop exit
PB: predicated region body
PF: predicated region fallthrough
CT: control target
= control target key end

     0   :  { %12 = vsyncpa [#allocation3], 0  ;;  %s1709_s0 = inlined_call_operand.vmem [shape: bf16[64,8], index: 0, kind: input, shape index: {}]   ;;  %s1710_s1 = inlined_call_operand.vmem [shape: bf16[8,128], index: 1, kind: input, shape index: {}]   ;;  %s1711_s2 = inlined_call_operand.vmem [shape: f32[1,128], index: 2, kind: input, shape index: {}]   ;;  %s1712_s3 = inlined_call_operand.hbm [shape: bf16[64,256], index: 3, kind: input, shape index: {}]   ;;  %s1713_s4 = inlined_call_operand.vmem [shape: f32[1,128], index: 4, kind: input, shape index: {}]   ;;  %s1714_s5 = inlined_call_operand.vmem [shape: bf16[32,128], index: 5, kind: input, shape index: {}]   ;;  %s1715_s6 = inlined_call_operand.vmem [shape: f32[1,128], index: 6, kind: input, shape index: {}]   ;;  %s1716_s7 = inlined_call_operand.hbm [shape: f32[8,128], index: 7, kind: output, shape index: {}]  }
   0x1   :  { %13 = vsyncpa [#allocation4], 0  ;;  %s1401_s24 = smov [#allocation2]  }
   0x2   :  { %s25_s25 = sshll.u32 %s1401_s24, 4  ;;  %s26_s25 = int_to_ptr.vmem [resolvable:$true] %s25_s25 }
   0x3   :  { %s1365_s26 = scalar_lea.vmem %s26_s25, 1024  ;;  %p1370_p1 = scmp.lt.s32.totalorder %s26_s25, %s26_s25 }
   0x4   :  { %p1366_p0 = scmp.ne.s32.totalorder %s26_s25, %s1365_s26  ;;  %p1371_p2 = scmp.lt.s32.totalorder %s1365_s26, %s1365_s26 }
   0x6   :  { %p1372_p3 = por %p1371_p2, %p1370_p1 }
   0x8   :  { %p1373_p4 = pnand %p1372_p3, %p1366_p0 }
   0xa   :  { %1376 = shalt.err (!%p1373_p4)
}
   0xb   :  { %s1402_s27 = smov 128   ;;  %s1403_s28 = smov 8  }
   0xc   :  { %31 = dma.hbm_to_vmem [thread:$0]  %s1712_s3, 1024, %s26_s25, [#allocation3], %s1402_s27, %s1402_s27, %s1403_s28  }
   0xd   :  { %1397 = dma.done.wait [#allocation3], 1024  }
   0xe   :  { %1398 = vsyncadd [#allocation3], 4294966272  ;;  %vm91_vm0 = vcmask 1043456   ;;  %vm78_vm1 = vcmask 64512   ;;  %v50_v0 = vld [vmem:[%s1710_s1] sm:$0xf] }
   0xf   :  { %1201 = vmatprep.subr.msk.bf16.mxu0 %vm91_vm0, %v50_v0  ;;  %v93_v1 = vsel %vm91_vm0, %v50_v0, 0  ;;  %v1211_v2 = vld [vmem:[%s1709_s0] sm:$0xff]   ;;  %v1212_v3 = vld [vmem:[%s1709_s0 + $0x8] sm:$0xff]   ;;  %s1404_s1 = smov 64   ;;  %s1405_s15 = smov 32   ;;  %v1406_v27 = vmov 0  }
  0x10   :  { %1184 = vmatpush3.bf16.msra.mxu0 %v93_v1  ;;  %1185 = vmatprep.mubr.msk.bf16.mxu0 %vm78_vm1, %v1211_v2  ;;  %v1469_v5 = vld [vmem:[%s1711_s2] ss:$0 sm:$0xff]  ;;  %v1477_v18 = vld [vmem:[#allocation2 + $0x34] ss:$8 sps:$4 sm:$0xff]   ;;  %v1479_v19 = vld [vmem:[#allocation2 + $0x30] ss:$8 sps:$4 sm:$0xff]  }
  0x11   :  { %v1481_v20 = vld [vmem:[#allocation2 + $0x24] ss:$8 sps:$4 sm:$0xff]   ;;  %252 = vmatprep.subr.bf16.mxu1 %v1477_v18  ;;  %362 = vmatprep.subr.bf16.mxu0 %v1477_v18  ;;  %v1486_v21 = vld [vmem:[#allocation2 + $0x20] ss:$8 sps:$4 sm:$0xff]   ;;  %v1490_v22 = vld [vmem:[#allocation2 + $0x14] ss:$8 sps:$4 sm:$0xff]  }
  0x12   :  { %253 = vmatpush1.bf16.msra.mxu1 %v1479_v19  ;;  %v1494_v23 = vld [vmem:[#allocation2 + $0x10] ss:$8 sps:$4 sm:$0xff]   ;;  %v1498_v24 = vld [vmem:[#allocation2 + $0x4] ss:$8 sps:$4 sm:$0xff]   ;;  %v1506_v26 = vld [vmem:[#allocation2] ss:$8 sps:$4 sm:$0xff]   ;;  %276 = vmatprep.mubr.bf16.mxu1 %v1406_v27 }
  0x13   :  { %1186 = vmatmul.mubr.msk.bf16.vlgmr.msra.gmra.mxu0 %vm78_vm1, %v1212_v3  ;;  %254 = vmatprep.subr.bf16.mxu1 %v1481_v20  ;;  %vm197_vm2 = vcmask 261120   ;;  %vm240_vm3 = vcmask 523264   ;;  %v1531_v37 = vld [vmem:[%s1713_s4] ss:$0 sm:$0xff]  ;;  %v1225_v63 = vld [vmem:[%s1709_s0 + $0x10] sm:$0xff]   ;;  %v1226_v0 = vld [vmem:[%s1709_s0 + $0x18] sm:$0xff]  }
  0x14   :  { %363 = vmatpush1.bf16.msra.mxu0 %v1479_v19  ;;  %1189 = vmatprep.mubr.msk.bf16.mxu0 %vm78_vm1, %v1225_v63  ;;  %vm1408_vm4 = vmmov 0   ;;  %s1409_s25 = smov [#allocation5]  }
  0x15   :  { %364 = vmatprep.subr.bf16.mxu0 %v1481_v20  ;;  %s1120_s26 = sshll.u32 %s1409_s25, 4  ;;  %s1121_s26 = int_to_ptr.vmem [resolvable:$true] %s1120_s26 }
  0x16   :  { %255 = vmatpush1.bf16.msra.mxu1 %v1486_v21  ;;  %p1382_p6 = scmp.lt.s32.totalorder %s1121_s26, %s1121_s26 }
  0x17   :  { %256 = vmatprep.subr.bf16.mxu1 %v1490_v22 }
  0x18   :  { %365 = vmatpush1.bf16.msra.mxu0 %v1486_v21 }
  0x19   :  { %366 = vmatprep.subr.bf16.mxu0 %v1490_v22 }
  0x1a   :  { %257 = vmatpush1.bf16.msra.mxu1 %v1494_v23 }
  0x1b   :  { %258 = vmatprep.subr.bf16.mxu1 %v1498_v24  ;;  %1190 = vmatmul.mubr.msk.bf16.gmra.mxu0 %vm78_vm1, %v1226_v0 }
  0x1c   :  { %367 = vmatpush1.bf16.msra.mxu0 %v1494_v23  ;;  %386 = vmatprep.mubr.bf16.mxu0 %v1406_v27 }
  0x1d   :  { %368 = vmatprep.subr.bf16.mxu0 %v1498_v24 }
  0x1e   :  { %259 = vmatpush1.bf16.msra.mxu1 %v1506_v26 }
  0x1f   :  { %466 = vmatprep.subr.bf16.mxu1 %v1477_v18 }
  0x20   :  { %369 = vmatpush1.bf16.msra.mxu0 %v1506_v26 }
  0x21   :  { %570 = vmatprep.subr.bf16.mxu0 %v1477_v18 }
  0xd3   :  { %v1464_v4 = vpop.f32.mrf.mxu0 }
  0xd5   :  { %v129_v6 = vpop.f32.mrf.mxu0 }
  0xd6   :  { %v130_v7 = vadd.f32 %v1469_v5, %v129_v6 }
  0xd7   :  { %v1525_v33 = vpop.f32.mrf.mxu0 }
  0xd8   :  { %1229 = vtanh.f32 %v130_v7  ;;  %v1138_v9 = vmul.f32 -1.442695, %v130_v7  ;;  %v141_v0 = vadd.f32 %v1525_v33, %v1469_v5 }
  0xd9   :  { %v132_v34 = vpop.f32.mrf.mxu0 }
  0xda   :  { %1231 = vpow2.f32 %v1138_v9  ;;  %v133_v35 = vadd.f32 %v1469_v5, %v132_v34 }
  0xe5   :  { %v1230_v8 = vpop.eup %1229 }
  0xe6   :  { %178 = vrot.lane.b32.xlu0 %v1230_v8, %s1404_s1 }
  0xe7   :  { %v1232_v10 = vpop.eup %1231 }
  0xe8   :  { %v172_v11 = vadd.f32 1.0, %v1232_v10 }
  0xea   :  { %1233 = vrcp.f32 %v172_v11 }
  0xf7   :  { %v1234_v12 = vpop.eup %1233 }
  0xf8   :  { %v176_v15 = vmul.f32 0.0, %v1234_v12 }
 0x158   :  { %v179_v13 = vpop.permute.xlu0 %178 }
 0x159   :  { %v181_v14 = vmul.f32 %v1234_v12, %v179_v13  ;;  %v1569_v13 = vpop.f32.mrf.mxu0 }
 0x15b   :  { %183 = vrot.lane.b32.xlu0 %v181_v14, %s1405_s15  ;;  %v1571_v14 = vpop.f32.mrf.mxu0 }
 0x1cd   :  { %v184_v16 = vpop.permute.xlu0 %183 }
 0x1ce   :  { %v1474_v17 = vadd.f32 %v184_v16, %v176_v15  ;;  %v1573_v15 = vpop.f32.mrf.mxu0 }
 0x1d0   :  { %1235 = vtanh.f32 %v1474_v17  ;;  %v1575_v16 = vpop.f32.mrf.mxu0 }
 0x1dd   :  { %v1236_v25 = vpop.eup %1235 }
 0x1de   :  { %189 = vrot.lane.b32.xlu1 %v1236_v25, %s1404_s1 }
 0x250   :  { %v190_v28 = vpop.permute.xlu1 %189 }
 0x251   :  { %v192_v29 = vmul.f32 %v1234_v12, %v190_v28 }
 0x253   :  { %194 = vrot.lane.b32.xlu1 %v192_v29, %s1405_s15 }
 0x2c5   :  { %v195_v30 = vpop.permute.xlu1 %194 }
 0x2c6   :  { %v198_v31 = vsel %vm197_vm2, %v195_v30, 0.0 }
 0x2c7   :  { %v199_v32 = vpack.c.bf16 %v198_v31, %v198_v31 }
 0x2c9   :  { %1147 = vmatmul.mubr.msk.bf16.vlgmr.msra.gmra.mxu1 %vm240_vm3, %v199_v32 }
 0x2ca   :  { %467 = vmatpush1.bf16.msra.mxu1 %v1479_v19  ;;  %490 = vmatprep.mubr.bf16.mxu1 %v1406_v27 }
 0x2cb   :  { %468 = vmatprep.subr.bf16.mxu1 %v1481_v20 }
 0x2ce   :  { %469 = vmatpush1.bf16.msra.mxu1 %v1486_v21 }
 0x2cf   :  { %470 = vmatprep.subr.bf16.mxu1 %v1490_v22 }
 0x2d2   :  { %471 = vmatpush1.bf16.msra.mxu1 %v1494_v23 }
 0x2d3   :  { %472 = vmatprep.subr.bf16.mxu1 %v1498_v24 }
 0x2d6   :  { %473 = vmatpush1.bf16.msra.mxu1 %v1506_v26 }
 0x2d7   :  { %674 = vmatprep.subr.bf16.mxu1 %v1477_v18 }
 0x389   :  { %v278_v36 = vpop.f32.mrf.mxu1 }
 0x38a   :  { %v316_v38 = vadd.f32 %v278_v36, %v133_v35 }
 0x38b   :  { %v280_v39 = vpop.f32.mrf.mxu1 }
 0x38c   :  { %1237 = vtanh.f32 %v316_v38  ;;  %v291_v40 = vadd.f32 %v1531_v37, %v280_v39  ;;  %v1150_v45 = vmul.f32 -1.442695, %v316_v38 }
 0x38d   :  { %v282_v41 = vpop.f32.mrf.mxu1 }
 0x38e   :  { %1239 = vtanh.f32 %v291_v40  ;;  %v1149_v46 = vmul.f32 -1.442695, %v291_v40 }
 0x38f   :  { %v283_v42 = vpop.f32.mrf.mxu1  ;;  %1241 = vpow2.f32 %v1150_v45 }
 0x390   :  { %1243 = vpow2.f32 %v1149_v46 }
 0x399   :  { %v1238_v43 = vpop.eup %1237 }
 0x39a   :  { %326 = vrot.lane.b32.xlu1 %v1238_v43, %s1404_s1 }
 0x39b   :  { %v1240_v44 = vpop.eup %1239 }
 0x39c   :  { %301 = vrot.lane.b32.xlu0 %v1240_v44, %s1404_s1  ;;  %v1242_v47 = vpop.eup %1241 }
 0x39d   :  { %v1244_v48 = vpop.eup %1243  ;;  %v320_v49 = vadd.f32 1.0, %v1242_v47 }
 0x39e   :  { %v295_v50 = vadd.f32 1.0, %v1244_v48 }
 0x39f   :  { %1245 = vrcp.f32 %v320_v49 }
 0x3a0   :  { %1247 = vrcp.f32 %v295_v50 }
 0x3ac   :  { %v1246_v51 = vpop.eup %1245 }
 0x3ad   :  { %v1248_v54 = vpop.eup %1247  ;;  %v324_v57 = vmul.f32 %v1246_v51, %v1474_v17  ;;  %v138_v17 = vadd.f32 %v1464_v4, %v1469_v5 }
 0x3ae   :  { %v299_v60 = vmul.f32 0.0, %v1248_v54 }
 0x40c   :  { %v327_v52 = vpop.permute.xlu1 %326 }
 0x40d   :  { %v329_v53 = vmul.f32 %v1246_v51, %v327_v52 }
 0x40e   :  { %v302_v55 = vpop.permute.xlu0 %301 }
 0x40f   :  { %331 = vrot.lane.b32.xlu1 %v329_v53, %s1405_s15  ;;  %v304_v56 = vmul.f32 %v1248_v54, %v302_v55 }
 0x411   :  { %306 = vrot.lane.b32.xlu0 %v304_v56, %s1405_s15 }
 0x481   :  { %v332_v58 = vpop.permute.xlu1 %331 }
 0x482   :  { %v1539_v59 = vadd.f32 %v332_v58, %v324_v57 }
 0x483   :  { %v307_v61 = vpop.permute.xlu0 %306 }
 0x484   :  { %1249 = vtanh.f32 %v1539_v59  ;;  %v1542_v62 = vadd.f32 %v307_v61, %v299_v60 }
 0x486   :  { %1251 = vtanh.f32 %v1542_v62 }
 0x491   :  { %v1250_v1 = vpop.eup %1249 }
 0x492   :  { %337 = vrot.lane.b32.xlu1 %v1250_v1, %s1404_s1 }
 0x493   :  { %v1252_v2 = vpop.eup %1251 }
 0x494   :  { %312 = vrot.lane.b32.xlu0 %v1252_v2, %s1404_s1 }
 0x504   :  { %v338_v3 = vpop.permute.xlu1 %337 }
 0x505   :  { %v340_v6 = vmul.f32 %v1246_v51, %v338_v3 }
 0x506   :  { %v313_v7 = vpop.permute.xlu0 %312 }
 0x507   :  { %342 = vrot.lane.b32.xlu0 %v340_v6, %s1405_s15  ;;  %v315_v8 = vmul.f32 %v1248_v54, %v313_v7 }
 0x509   :  { %346 = vrot.lane.b32.xlu1 %v315_v8, %s1404_s1 }
 0x579   :  { %v343_v9 = vpop.permute.xlu0 %342 }
 0x57b   :  { %v347_v10 = vpop.permute.xlu1 %346 }
 0x57c   :  { %v349_v11 = vsel %vm197_vm2, %v343_v9, %v347_v10 }
 0x57d   :  { %v350_v12 = vpack.c.bf16 %v349_v11, %v349_v11 }
 0x57f   :  { %1151 = vmatmul.mubr.msk.bf16.vlgmr.msra.gmra.mxu0 %vm240_vm3, %v350_v12 }
 0x580   :  { %571 = vmatpush1.bf16.msra.mxu0 %v1479_v19  ;;  %594 = vmatprep.mubr.bf16.mxu0 %v1406_v27 }
 0x581   :  { %572 = vmatprep.subr.bf16.mxu0 %v1481_v20 }
 0x584   :  { %573 = vmatpush1.bf16.msra.mxu0 %v1486_v21 }
 0x585   :  { %574 = vmatprep.subr.bf16.mxu0 %v1490_v22 }
 0x588   :  { %575 = vmatpush1.bf16.msra.mxu0 %v1494_v23 }
 0x589   :  { %576 = vmatprep.subr.bf16.mxu0 %v1498_v24 }
 0x58c   :  { %577 = vmatpush1.bf16.msra.mxu0 %v1506_v26 }
 0x58d   :  { %778 = vmatprep.subr.bf16.mxu0 %v1477_v18 }
 0x63f   :  { %v388_v25 = vpop.f32.mrf.mxu0 }
 0x640   :  { %v420_v28 = vadd.f32 %v388_v25, %v138_v17 }
 0x641   :  { %v390_v29 = vpop.f32.mrf.mxu0 }
 0x642   :  { %1253 = vtanh.f32 %v420_v28  ;;  %v395_v30 = vadd.f32 %v1531_v37, %v390_v29  ;;  %v1153_v36 = vmul.f32 -1.442695, %v420_v28 }
 0x643   :  { %v392_v31 = vpop.f32.mrf.mxu0 }
 0x644   :  { %1255 = vtanh.f32 %v395_v30  ;;  %v1152_v38 = vmul.f32 -1.442695, %v395_v30 }
 0x645   :  { %v393_v32 = vpop.f32.mrf.mxu0  ;;  %1257 = vpow2.f32 %v1153_v36 }
 0x646   :  { %1259 = vpow2.f32 %v1152_v38 }
 0x64f   :  { %v1254_v34 = vpop.eup %1253 }
 0x650   :  { %430 = vrot.lane.b32.xlu1 %v1254_v34, %s1404_s1 }
 0x651   :  { %v1256_v35 = vpop.eup %1255 }
 0x652   :  { %405 = vrot.lane.b32.xlu0 %v1256_v35, %s1404_s1  ;;  %v1258_v4 = vpop.eup %1257 }
 0x653   :  { %v1260_v39 = vpop.eup %1259  ;;  %v424_v40 = vadd.f32 1.0, %v1258_v4 }
 0x654   :  { %v399_v41 = vadd.f32 1.0, %v1260_v39 }
 0x655   :  { %1261 = vrcp.f32 %v424_v40 }
 0x656   :  { %1263 = vrcp.f32 %v399_v41 }
 0x662   :  { %v1262_v42 = vpop.eup %1261 }
 0x663   :  { %v1264_v45 = vpop.eup %1263  ;;  %v428_v48 = vmul.f32 %v1262_v42, %v1539_v59 }
 0x664   :  { %v403_v51 = vmul.f32 %v1264_v45, %v1542_v62 }
 0x6c2   :  { %v431_v43 = vpop.permute.xlu1 %430 }
 0x6c3   :  { %v433_v44 = vmul.f32 %v1262_v42, %v431_v43 }
 0x6c4   :  { %v406_v46 = vpop.permute.xlu0 %405 }
 0x6c5   :  { %435 = vrot.lane.b32.xlu1 %v433_v44, %s1405_s15  ;;  %v408_v47 = vmul.f32 %v1264_v45, %v406_v46 }
 0x6c7   :  { %410 = vrot.lane.b32.xlu0 %v408_v47, %s1405_s15 }
 0x737   :  { %v436_v49 = vpop.permute.xlu1 %435 }
 0x738   :  { %v438_v50 = vadd.f32 %v436_v49, %v428_v48 }
 0x739   :  { %v411_v52 = vpop.permute.xlu0 %410 }
 0x73a   :  { %1265 = vtanh.f32 %v438_v50  ;;  %v413_v53 = vadd.f32 %v411_v52, %v403_v51  ;;  %v146_v52 = vadd.f32 %v1469_v5, %v1571_v14 }
 0x73c   :  { %1267 = vtanh.f32 %v413_v53 }
 0x747   :  { %v1266_v54 = vpop.eup %1265 }
 0x748   :  { %441 = vrot.lane.b32.xlu1 %v1266_v54, %s1404_s1 }
 0x749   :  { %v1268_v55 = vpop.eup %1267 }
 0x74a   :  { %416 = vrot.lane.b32.xlu0 %v1268_v55, %s1404_s1 }
 0x7ba   :  { %v442_v56 = vpop.permute.xlu1 %441 }
 0x7bb   :  { %v444_v57 = vmul.f32 %v1262_v42, %v442_v56 }
 0x7bc   :  { %v417_v58 = vpop.permute.xlu0 %416 }
 0x7bd   :  { %446 = vrot.lane.b32.xlu0 %v444_v57, %s1405_s15  ;;  %v419_v59 = vmul.f32 %v1264_v45, %v417_v58 }
 0x7bf   :  { %450 = vrot.lane.b32.xlu1 %v419_v59, %s1404_s1 }
 0x82f   :  { %v447_v60 = vpop.permute.xlu0 %446 }
 0x831   :  { %v451_v61 = vpop.permute.xlu1 %450 }
 0x832   :  { %v453_v62 = vsel %vm197_vm2, %v447_v60, %v451_v61 }
 0x833   :  { %v454_v63 = vpack.c.bf16 %v453_v62, %v453_v62 }
 0x835   :  { %1154 = vmatmul.mubr.msk.bf16.vlgmr.msra.gmra.mxu1 %vm240_vm3, %v454_v63 }
 0x836   :  { %675 = vmatpush1.bf16.msra.mxu1 %v1479_v19  ;;  %698 = vmatprep.mubr.bf16.mxu1 %v1406_v27 }
 0x837   :  { %676 = vmatprep.subr.bf16.mxu1 %v1481_v20 }
 0x83a   :  { %677 = vmatpush1.bf16.msra.mxu1 %v1486_v21 }
 0x83b   :  { %678 = vmatprep.subr.bf16.mxu1 %v1490_v22 }
 0x83e   :  { %679 = vmatpush1.bf16.msra.mxu1 %v1494_v23 }
 0x83f   :  { %680 = vmatprep.subr.bf16.mxu1 %v1498_v24 }
 0x842   :  { %681 = vmatpush1.bf16.msra.mxu1 %v1506_v26 }
 0x843   :  { %882 = vmatprep.subr.bf16.mxu1 %v1477_v18 }
 0x8f5   :  { %v492_v1 = vpop.f32.mrf.mxu1 }
 0x8f6   :  { %v524_v2 = vadd.f32 %v492_v1, %v141_v0 }
 0x8f7   :  { %v494_v3 = vpop.f32.mrf.mxu1 }
 0x8f8   :  { %1269 = vtanh.f32 %v524_v2  ;;  %v499_v6 = vadd.f32 %v1531_v37, %v494_v3  ;;  %v1156_v11 = vmul.f32 -1.442695, %v524_v2 }
 0x8f9   :  { %v496_v7 = vpop.f32.mrf.mxu1 }
 0x8fa   :  { %1271 = vtanh.f32 %v499_v6  ;;  %v1155_v12 = vmul.f32 -1.442695, %v499_v6 }
 0x8fb   :  { %v497_v8 = vpop.f32.mrf.mxu1  ;;  %1273 = vpow2.f32 %v1156_v11 }
 0x8fc   :  { %1275 = vpow2.f32 %v1155_v12 }
 0x905   :  { %v1270_v9 = vpop.eup %1269 }
 0x906   :  { %534 = vrot.lane.b32.xlu1 %v1270_v9, %s1404_s1 }
 0x907   :  { %v1272_v10 = vpop.eup %1271 }
 0x908   :  { %509 = vrot.lane.b32.xlu0 %v1272_v10, %s1404_s1  ;;  %v1274_v33 = vpop.eup %1273 }
 0x909   :  { %v1276_v17 = vpop.eup %1275  ;;  %v528_v25 = vadd.f32 1.0, %v1274_v33 }
 0x90a   :  { %v503_v28 = vadd.f32 1.0, %v1276_v17 }
 0x90b   :  { %1277 = vrcp.f32 %v528_v25 }
 0x90c   :  { %1279 = vrcp.f32 %v503_v28 }
 0x918   :  { %v1278_v29 = vpop.eup %1277 }
 0x919   :  { %v1280_v32 = vpop.eup %1279  ;;  %v532_v36 = vmul.f32 %v1278_v29, %v438_v50 }
 0x91a   :  { %v507_v39 = vmul.f32 %v1280_v32, %v413_v53 }
 0x978   :  { %v535_v30 = vpop.permute.xlu1 %534 }
 0x979   :  { %v537_v31 = vmul.f32 %v1278_v29, %v535_v30 }
 0x97a   :  { %v510_v34 = vpop.permute.xlu0 %509 }
 0x97b   :  { %539 = vrot.lane.b32.xlu1 %v537_v31, %s1405_s15  ;;  %v512_v35 = vmul.f32 %v1280_v32, %v510_v34 }
 0x97d   :  { %514 = vrot.lane.b32.xlu0 %v512_v35, %s1405_s15 }
 0x9ed   :  { %v540_v38 = vpop.permute.xlu1 %539 }
 0x9ee   :  { %v542_v4 = vadd.f32 %v540_v38, %v532_v36 }
 0x9ef   :  { %v515_v40 = vpop.permute.xlu0 %514 }
 0x9f0   :  { %1281 = vtanh.f32 %v542_v4  ;;  %v517_v41 = vadd.f32 %v515_v40, %v507_v39 }
 0x9f2   :  { %1283 = vtanh.f32 %v517_v41 }
 0x9fd   :  { %v1282_v42 = vpop.eup %1281 }
 0x9fe   :  { %545 = vrot.lane.b32.xlu1 %v1282_v42, %s1404_s1 }
 0x9ff   :  { %v1284_v43 = vpop.eup %1283 }
 0xa00   :  { %520 = vrot.lane.b32.xlu0 %v1284_v43, %s1404_s1 }
 0xa70   :  { %v546_v44 = vpop.permute.xlu1 %545 }
 0xa71   :  { %v548_v45 = vmul.f32 %v1278_v29, %v546_v44 }
 0xa72   :  { %v521_v46 = vpop.permute.xlu0 %520 }
 0xa73   :  { %550 = vrot.lane.b32.xlu0 %v548_v45, %s1405_s15  ;;  %v523_v47 = vmul.f32 %v1280_v32, %v521_v46 }
 0xa75   :  { %554 = vrot.lane.b32.xlu1 %v523_v47, %s1404_s1 }
 0xae5   :  { %v551_v48 = vpop.permute.xlu0 %550 }
 0xae7   :  { %v555_v49 = vpop.permute.xlu1 %554 }
 0xae8   :  { %v557_v50 = vsel %vm197_vm2, %v551_v48, %v555_v49 }
 0xae9   :  { %v558_v51 = vpack.c.bf16 %v557_v50, %v557_v50 }
 0xaeb   :  { %1157 = vmatmul.mubr.msk.bf16.vlgmr.msra.gmra.mxu0 %vm240_vm3, %v558_v51 }
 0xaec   :  { %779 = vmatpush1.bf16.msra.mxu0 %v1479_v19  ;;  %802 = vmatprep.mubr.bf16.mxu0 %v1406_v27 }
 0xaed   :  { %780 = vmatprep.subr.bf16.mxu0 %v1481_v20 }
 0xaf0   :  { %781 = vmatpush1.bf16.msra.mxu0 %v1486_v21 }
 0xaf1   :  { %782 = vmatprep.subr.bf16.mxu0 %v1490_v22 }
 0xaf4   :  { %783 = vmatpush1.bf16.msra.mxu0 %v1494_v23 }
 0xaf5   :  { %784 = vmatprep.subr.bf16.mxu0 %v1498_v24 }
 0xaf8   :  { %785 = vmatpush1.bf16.msra.mxu0 %v1506_v26 }
 0xaf9   :  { %986 = vmatprep.subr.bf16.mxu0 %v1477_v18 }
 0xbab   :  { %v596_v53 = vpop.f32.mrf.mxu0 }
 0xbac   :  { %v628_v54 = vadd.f32 %v596_v53, %v146_v52 }
 0xbad   :  { %v598_v55 = vpop.f32.mrf.mxu0 }
 0xbae   :  { %1285 = vtanh.f32 %v628_v54  ;;  %v603_v56 = vadd.f32 %v1531_v37, %v598_v55  ;;  %v1159_v61 = vmul.f32 -1.442695, %v628_v54 }
 0xbaf   :  { %v600_v57 = vpop.f32.mrf.mxu0 }
 0xbb0   :  { %1287 = vtanh.f32 %v603_v56  ;;  %v1158_v18 = vmul.f32 -1.442695, %v603_v56 }
 0xbb1   :  { %v601_v58 = vpop.f32.mrf.mxu0  ;;  %1289 = vpow2.f32 %v1159_v61 }
 0xbb2   :  { %1291 = vpow2.f32 %v1158_v18 }
 0xbbb   :  { %v1286_v59 = vpop.eup %1285 }
 0xbbc   :  { %638 = vrot.lane.b32.xlu1 %v1286_v59, %s1404_s1 }
 0xbbd   :  { %v1288_v60 = vpop.eup %1287 }
 0xbbe   :  { %613 = vrot.lane.b32.xlu0 %v1288_v60, %s1404_s1  ;;  %v1290_v14 = vpop.eup %1289 }
 0xbbf   :  { %v1292_v62 = vpop.eup %1291  ;;  %v632_v63 = vadd.f32 1.0, %v1290_v14 }
 0xbc0   :  { %v607_v0 = vadd.f32 1.0, %v1292_v62 }
 0xbc1   :  { %1293 = vrcp.f32 %v632_v63 }
 0xbc2   :  { %1295 = vrcp.f32 %v607_v0 }
 0xbce   :  { %v1294_v1 = vpop.eup %1293 }
 0xbcf   :  { %v1296_v6 = vpop.eup %1295  ;;  %v636_v9 = vmul.f32 %v1294_v1, %v542_v4  ;;  %v149_v4 = vadd.f32 %v1469_v5, %v1575_v16 }
 0xbd0   :  { %v611_v12 = vmul.f32 %v1296_v6, %v517_v41 }
 0xc2e   :  { %v639_v2 = vpop.permute.xlu1 %638 }
 0xc2f   :  { %v641_v3 = vmul.f32 %v1294_v1, %v639_v2 }
 0xc30   :  { %v614_v7 = vpop.permute.xlu0 %613 }
 0xc31   :  { %643 = vrot.lane.b32.xlu1 %v641_v3, %s1405_s15  ;;  %v616_v8 = vmul.f32 %v1296_v6, %v614_v7 }
 0xc33   :  { %618 = vrot.lane.b32.xlu0 %v616_v8, %s1405_s15 }
 0xca3   :  { %v644_v10 = vpop.permute.xlu1 %643 }
 0xca4   :  { %v646_v11 = vadd.f32 %v644_v10, %v636_v9  ;;  %v154_v10 = vadd.f32 %v1569_v13, %v1469_v5 }
 0xca5   :  { %v619_v33 = vpop.permute.xlu0 %618 }
 0xca6   :  { %1297 = vtanh.f32 %v646_v11  ;;  %v621_v17 = vadd.f32 %v619_v33, %v611_v12 }
 0xca8   :  { %1299 = vtanh.f32 %v621_v17 }
 0xcb3   :  { %v1298_v25 = vpop.eup %1297 }
 0xcb4   :  { %649 = vrot.lane.b32.xlu1 %v1298_v25, %s1404_s1 }
 0xcb5   :  { %v1300_v28 = vpop.eup %1299 }
 0xcb6   :  { %624 = vrot.lane.b32.xlu0 %v1300_v28, %s1404_s1 }
 0xd26   :  { %v650_v29 = vpop.permute.xlu1 %649 }
 0xd27   :  { %v652_v30 = vmul.f32 %v1294_v1, %v650_v29 }
 0xd28   :  { %v625_v31 = vpop.permute.xlu0 %624 }
 0xd29   :  { %654 = vrot.lane.b32.xlu0 %v652_v30, %s1405_s15  ;;  %v627_v32 = vmul.f32 %v1296_v6, %v625_v31 }
 0xd2b   :  { %658 = vrot.lane.b32.xlu1 %v627_v32, %s1404_s1 }
 0xd9b   :  { %v655_v34 = vpop.permute.xlu0 %654 }
 0xd9d   :  { %v659_v35 = vpop.permute.xlu1 %658 }
 0xd9e   :  { %v661_v36 = vsel %vm197_vm2, %v655_v34, %v659_v35 }
 0xd9f   :  { %v662_v38 = vpack.c.bf16 %v661_v36, %v661_v36 }
 0xda1   :  { %1160 = vmatmul.mubr.msk.bf16.vlgmr.msra.gmra.mxu1 %vm240_vm3, %v662_v38 }
 0xda2   :  { %883 = vmatpush1.bf16.msra.mxu1 %v1479_v19  ;;  %906 = vmatprep.mubr.bf16.mxu1 %v1406_v27 }
 0xda3   :  { %884 = vmatprep.subr.bf16.mxu1 %v1481_v20 }
 0xda6   :  { %885 = vmatpush1.bf16.msra.mxu1 %v1486_v21 }
 0xda7   :  { %886 = vmatprep.subr.bf16.mxu1 %v1490_v22 }
 0xdaa   :  { %887 = vmatpush1.bf16.msra.mxu1 %v1494_v23 }
 0xdab   :  { %888 = vmatprep.subr.bf16.mxu1 %v1498_v24 }
 0xdae   :  { %889 = vmatpush1.bf16.msra.mxu1 %v1506_v26 }
 0xe61   :  { %v700_v39 = vpop.f32.mrf.mxu1 }
 0xe62   :  { %v732_v40 = vadd.f32 %v700_v39, %v149_v4 }
 0xe63   :  { %v702_v41 = vpop.f32.mrf.mxu1 }
 0xe64   :  { %1301 = vtanh.f32 %v732_v40  ;;  %v707_v42 = vadd.f32 %v1531_v37, %v702_v41  ;;  %v1162_v47 = vmul.f32 -1.442695, %v732_v40 }
 0xe65   :  { %v704_v43 = vpop.f32.mrf.mxu1 }
 0xe66   :  { %1303 = vtanh.f32 %v707_v42  ;;  %v1161_v48 = vmul.f32 -1.442695, %v707_v42 }
 0xe67   :  { %v705_v44 = vpop.f32.mrf.mxu1  ;;  %1305 = vpow2.f32 %v1162_v47 }
 0xe68   :  { %1307 = vpow2.f32 %v1161_v48 }
 0xe71   :  { %v1302_v45 = vpop.eup %1301 }
 0xe72   :  { %742 = vrot.lane.b32.xlu1 %v1302_v45, %s1404_s1 }
 0xe73   :  { %v1304_v46 = vpop.eup %1303 }
 0xe74   :  { %717 = vrot.lane.b32.xlu0 %v1304_v46, %s1404_s1  ;;  %v1306_v16 = vpop.eup %1305 }
 0xe75   :  { %v1308_v49 = vpop.eup %1307  ;;  %v736_v50 = vadd.f32 1.0, %v1306_v16 }
 0xe76   :  { %v711_v51 = vadd.f32 1.0, %v1308_v49 }
 0xe77   :  { %1309 = vrcp.f32 %v736_v50  ;;  %v157_v50 = vadd.f32 %v1573_v15, %v1469_v5 }
 0xe78   :  { %1311 = vrcp.f32 %v711_v51 }
 0xe84   :  { %v1310_v52 = vpop.eup %1309 }
 0xe85   :  { %v1312_v55 = vpop.eup %1311  ;;  %v740_v58 = vmul.f32 %v1310_v52, %v646_v11 }
 0xe86   :  { %v715_v61 = vmul.f32 %v1312_v55, %v621_v17 }
 0xee4   :  { %v743_v53 = vpop.permute.xlu1 %742 }
 0xee5   :  { %v745_v54 = vmul.f32 %v1310_v52, %v743_v53 }
 0xee6   :  { %v718_v56 = vpop.permute.xlu0 %717 }
 0xee7   :  { %747 = vrot.lane.b32.xlu1 %v745_v54, %s1405_s15  ;;  %v720_v57 = vmul.f32 %v1312_v55, %v718_v56 }
 0xee9   :  { %722 = vrot.lane.b32.xlu0 %v720_v57, %s1405_s15 }
 0xf59   :  { %v748_v59 = vpop.permute.xlu1 %747 }
 0xf5a   :  { %v750_v60 = vadd.f32 %v748_v59, %v740_v58 }
 0xf5b   :  { %v723_v18 = vpop.permute.xlu0 %722 }
 0xf5c   :  { %1313 = vtanh.f32 %v750_v60  ;;  %v725_v14 = vadd.f32 %v723_v18, %v715_v61 }
 0xf5e   :  { %1315 = vtanh.f32 %v725_v14 }
 0xf69   :  { %v1314_v62 = vpop.eup %1313 }
 0xf6a   :  { %753 = vrot.lane.b32.xlu1 %v1314_v62, %s1404_s1 }
 0xf6b   :  { %v1316_v63 = vpop.eup %1315 }
 0xf6c   :  { %728 = vrot.lane.b32.xlu0 %v1316_v63, %s1404_s1 }
 0xfdc   :  { %v754_v0 = vpop.permute.xlu1 %753 }
 0xfdd   :  { %v756_v1 = vmul.f32 %v1310_v52, %v754_v0 }
 0xfde   :  { %v729_v2 = vpop.permute.xlu0 %728 }
 0xfdf   :  { %758 = vrot.lane.b32.xlu0 %v756_v1, %s1405_s15  ;;  %v731_v3 = vmul.f32 %v1312_v55, %v729_v2 }
 0xfe1   :  { %762 = vrot.lane.b32.xlu1 %v731_v3, %s1404_s1 }
0x1051   :  { %v759_v6 = vpop.permute.xlu0 %758 }
0x1053   :  { %v763_v7 = vpop.permute.xlu1 %762 }
0x1054   :  { %v765_v8 = vsel %vm197_vm2, %v759_v6, %v763_v7 }
0x1055   :  { %v766_v9 = vpack.c.bf16 %v765_v8, %v765_v8 }
0x1057   :  { %1163 = vmatmul.mubr.msk.bf16.vlgmr.msra.gmra.mxu0 %vm240_vm3, %v766_v9 }
0x1058   :  { %987 = vmatpush1.bf16.msra.mxu0 %v1479_v19  ;;  %1010 = vmatprep.mubr.bf16.mxu0 %v1406_v27 }
0x1059   :  { %988 = vmatprep.subr.bf16.mxu0 %v1481_v20 }
0x105c   :  { %989 = vmatpush1.bf16.msra.mxu0 %v1486_v21 }
0x105d   :  { %990 = vmatprep.subr.bf16.mxu0 %v1490_v22 }
0x1060   :  { %991 = vmatpush1.bf16.msra.mxu0 %v1494_v23 }
0x1061   :  { %992 = vmatprep.subr.bf16.mxu0 %v1498_v24 }
0x1064   :  { %993 = vmatpush1.bf16.msra.mxu0 %v1506_v26 }
0x1117   :  { %v804_v11 = vpop.f32.mrf.mxu0 }
0x1118   :  { %v836_v12 = vadd.f32 %v804_v11, %v154_v10 }
0x1119   :  { %v806_v19 = vpop.f32.mrf.mxu0 }
0x111a   :  { %1317 = vtanh.f32 %v836_v12  ;;  %v811_v27 = vadd.f32 %v1531_v37, %v806_v19  ;;  %v1165_v23 = vmul.f32 -1.442695, %v836_v12 }
0x111b   :  { %v808_v20 = vpop.f32.mrf.mxu0 }
0x111c   :  { %1319 = vtanh.f32 %v811_v27  ;;  %v1164_v24 = vmul.f32 -1.442695, %v811_v27 }
0x111d   :  { %v809_v21 = vpop.f32.mrf.mxu0  ;;  %1321 = vpow2.f32 %v1165_v23 }
0x111e   :  { %1323 = vpow2.f32 %v1164_v24 }
0x1127   :  { %v1318_v33 = vpop.eup %1317 }
0x1128   :  { %846 = vrot.lane.b32.xlu1 %v1318_v33, %s1404_s1 }
0x1129   :  { %v1320_v22 = vpop.eup %1319 }
0x112a   :  { %821 = vrot.lane.b32.xlu0 %v1320_v22, %s1404_s1  ;;  %v1322_v26 = vpop.eup %1321 }
0x112b   :  { %v1324_v13 = vpop.eup %1323  ;;  %v840_v17 = vadd.f32 1.0, %v1322_v26 }
0x112c   :  { %v815_v25 = vadd.f32 1.0, %v1324_v13 }
0x112d   :  { %1325 = vrcp.f32 %v840_v17 }
0x112e   :  { %1327 = vrcp.f32 %v815_v25 }
0x113a   :  { %v1326_v28 = vpop.eup %1325 }
0x113b   :  { %v1328_v31 = vpop.eup %1327  ;;  %v844_v35 = vmul.f32 %v1326_v28, %v750_v60 }
0x113c   :  { %v819_v4 = vmul.f32 %v1328_v31, %v725_v14 }
0x119a   :  { %v847_v29 = vpop.permute.xlu1 %846 }
0x119b   :  { %v849_v30 = vmul.f32 %v1326_v28, %v847_v29 }
0x119c   :  { %v822_v32 = vpop.permute.xlu0 %821 }
0x119d   :  { %851 = vrot.lane.b32.xlu1 %v849_v30, %s1405_s15  ;;  %v824_v34 = vmul.f32 %v1328_v31, %v822_v32 }
0x119f   :  { %826 = vrot.lane.b32.xlu0 %v824_v34, %s1405_s15 }
0x120f   :  { %v852_v36 = vpop.permute.xlu1 %851 }
0x1210   :  { %v854_v38 = vadd.f32 %v852_v36, %v844_v35 }
0x1211   :  { %v827_v39 = vpop.permute.xlu0 %826 }
0x1212   :  { %1329 = vtanh.f32 %v854_v38  ;;  %v829_v40 = vadd.f32 %v827_v39, %v819_v4 }
0x1214   :  { %1331 = vtanh.f32 %v829_v40 }
0x121f   :  { %v1330_v41 = vpop.eup %1329 }
0x1220   :  { %857 = vrot.lane.b32.xlu1 %v1330_v41, %s1404_s1  ;;  %v1228_v41 = vld [vmem:[%s1714_s5] sm:$0xff]  }
0x1221   :  { %v1332_v42 = vpop.eup %1331 }
0x1222   :  { %832 = vrot.lane.b32.xlu0 %v1332_v42, %s1404_s1 }
0x1292   :  { %v858_v43 = vpop.permute.xlu1 %857 }
0x1293   :  { %v860_v44 = vmul.f32 %v1326_v28, %v858_v43 }
0x1294   :  { %v833_v45 = vpop.permute.xlu0 %832 }
0x1295   :  { %862 = vrot.lane.b32.xlu0 %v860_v44, %s1405_s15  ;;  %v835_v46 = vmul.f32 %v1328_v31, %v833_v45 }
0x1297   :  { %866 = vrot.lane.b32.xlu1 %v835_v46, %s1404_s1 }
0x1307   :  { %v863_v47 = vpop.permute.xlu0 %862 }
0x1309   :  { %v867_v48 = vpop.permute.xlu1 %866 }
0x130a   :  { %v869_v16 = vsel %vm197_vm2, %v863_v47, %v867_v48  ;;  %v1171_v47 = vld [vmem:[%s1715_s6] ss:$0 sm:$0xff] }
0x130b   :  { %v870_v49 = vpack.c.bf16 %v869_v16, %v869_v16 }
0x130d   :  { %1166 = vmatmul.mubr.msk.bf16.vlgmr.msra.gmra.mxu1 %vm240_vm3, %v870_v49 }
0x13cd   :  { %v908_v51 = vpop.f32.mrf.mxu1 }
0x13ce   :  { %v940_v52 = vadd.f32 %v908_v51, %v157_v50 }
0x13cf   :  { %v910_v53 = vpop.f32.mrf.mxu1 }
0x13d0   :  { %1333 = vtanh.f32 %v940_v52  ;;  %v915_v54 = vadd.f32 %v1531_v37, %v910_v53  ;;  %v1168_v59 = vmul.f32 -1.442695, %v940_v52 }
0x13d1   :  { %v912_v55 = vpop.f32.mrf.mxu1 }
0x13d2   :  { %1335 = vtanh.f32 %v915_v54  ;;  %v1167_v60 = vmul.f32 -1.442695, %v915_v54 }
0x13d3   :  { %v913_v56 = vpop.f32.mrf.mxu1  ;;  %1337 = vpow2.f32 %v1168_v59 }
0x13d4   :  { %1339 = vpow2.f32 %v1167_v60 }
0x13dd   :  { %v1334_v57 = vpop.eup %1333 }
0x13de   :  { %950 = vrot.lane.b32.xlu1 %v1334_v57, %s1404_s1 }
0x13df   :  { %v1336_v58 = vpop.eup %1335 }
0x13e0   :  { %925 = vrot.lane.b32.xlu0 %v1336_v58, %s1404_s1  ;;  %v1338_v5 = vpop.eup %1337 }
0x13e1   :  { %v1340_v15 = vpop.eup %1339  ;;  %v944_v61 = vadd.f32 1.0, %v1338_v5 }
0x13e2   :  { %v919_v18 = vadd.f32 1.0, %v1340_v15 }
0x13e3   :  { %1341 = vrcp.f32 %v944_v61 }
0x13e4   :  { %1343 = vrcp.f32 %v919_v18 }
0x13f0   :  { %v1342_v14 = vpop.eup %1341 }
0x13f1   :  { %v1344_v0 = vpop.eup %1343  ;;  %v948_v3 = vmul.f32 %v1342_v14, %v854_v38 }
0x13f2   :  { %v923_v8 = vmul.f32 %v1344_v0, %v829_v40  ;;  %v1407_v40 = vmov 0.0  }
0x13f3   :  { %1193 = vmatprep.subr.bf16.mxu1 %v1407_v40  ;;  %1197 = vmatprep.mubr.msk.bf16.mxu1 %vm1408_vm4, %v1407_v40 }
0x1450   :  { %v951_v62 = vpop.permute.xlu1 %950 }
0x1451   :  { %v953_v63 = vmul.f32 %v1342_v14, %v951_v62 }
0x1452   :  { %v926_v1 = vpop.permute.xlu0 %925 }
0x1453   :  { %955 = vrot.lane.b32.xlu1 %v953_v63, %s1405_s15  ;;  %v928_v2 = vmul.f32 %v1344_v0, %v926_v1 }
0x1455   :  { %930 = vrot.lane.b32.xlu0 %v928_v2, %s1405_s15 }
0x14c5   :  { %v956_v6 = vpop.permute.xlu1 %955 }
0x14c6   :  { %v958_v7 = vadd.f32 %v956_v6, %v948_v3 }
0x14c7   :  { %v931_v9 = vpop.permute.xlu0 %930 }
0x14c8   :  { %1345 = vtanh.f32 %v958_v7  ;;  %v933_v10 = vadd.f32 %v931_v9, %v923_v8 }
0x14ca   :  { %1347 = vtanh.f32 %v933_v10 }
0x14d5   :  { %v1346_v11 = vpop.eup %1345 }
0x14d6   :  { %961 = vrot.lane.b32.xlu1 %v1346_v11, %s1404_s1 }
0x14d7   :  { %v1348_v12 = vpop.eup %1347 }
0x14d8   :  { %936 = vrot.lane.b32.xlu0 %v1348_v12, %s1404_s1 }
0x1548   :  { %v962_v19 = vpop.permute.xlu1 %961 }
0x1549   :  { %v964_v27 = vmul.f32 %v1342_v14, %v962_v19 }
0x154a   :  { %v937_v20 = vpop.permute.xlu0 %936 }
0x154b   :  { %966 = vrot.lane.b32.xlu0 %v964_v27, %s1405_s15  ;;  %v939_v21 = vmul.f32 %v1344_v0, %v937_v20 }
0x154d   :  { %970 = vrot.lane.b32.xlu1 %v939_v21, %s1404_s1 }
0x15bd   :  { %v967_v33 = vpop.permute.xlu0 %966 }
0x15bf   :  { %v971_v22 = vpop.permute.xlu1 %970 }
0x15c0   :  { %v973_v23 = vsel %vm197_vm2, %v967_v33, %v971_v22 }
0x15c1   :  { %v974_v24 = vpack.c.bf16 %v973_v23, %v973_v23 }
0x15c3   :  { %1169 = vmatmul.mubr.msk.bf16.vlgmr.msra.gmra.mxu0 %vm240_vm3, %v974_v24 }
0x1683   :  { %v1012_v26 = vpop.f32.mrf.mxu0 }
0x1685   :  { %v1013_v13 = vpop.f32.mrf.mxu0 }
0x1686   :  { %v1018_v17 = vadd.f32 %v1531_v37, %v1013_v13  ;;  %v1227_v37 = vld [vmem:[%s1714_s5 + $0x8] sm:$0xff]   ;;  %s1377_s5 = scalar_lea.vmem %s1121_s26, 128 }
0x1687   :  { %v1015_v25 = vpop.f32.mrf.mxu0  ;;  %1194 = vmatpush3.bf16.msra.mxu1 %v1227_v37  ;;  %p1378_p5 = scmp.ne.s32.totalorder %s1121_s26, %s1377_s5  ;;  %p1383_p7 = scmp.lt.s32.totalorder %s1377_s5, %s1377_s5 }
0x1688   :  { %1349 = vtanh.f32 %v1018_v17  ;;  %v1170_v30 = vmul.f32 -1.442695, %v1018_v17  ;;  %1195 = vmatprep.subr.bf16.mxu1 %v1407_v40 }
0x1689   :  { %v1016_v28 = vpop.f32.mrf.mxu0  ;;  %p1384_p8 = por %p1383_p7, %p1382_p6 }
0x168a   :  { %1351 = vpow2.f32 %v1170_v30 }
0x168b   :  { %1196 = vmatpush3.bf16.msra.mxu1 %v1228_v41  ;;  %p1385_p9 = pnand %p1384_p8, %p1378_p5 }
0x1695   :  { %v1350_v29 = vpop.eup %1349 }
0x1696   :  { %1028 = vrot.lane.b32.xlu0 %v1350_v29, %s1404_s1 }
0x1697   :  { %v1352_v31 = vpop.eup %1351 }
0x1698   :  { %v1022_v32 = vadd.f32 1.0, %v1352_v31 }
0x169a   :  { %1353 = vrcp.f32 %v1022_v32 }
0x16a7   :  { %v1354_v34 = vpop.eup %1353 }
0x16a8   :  { %v1026_v38 = vmul.f32 %v1354_v34, %v933_v10 }
0x1708   :  { %v1029_v35 = vpop.permute.xlu0 %1028 }
0x1709   :  { %v1031_v36 = vmul.f32 %v1354_v34, %v1029_v35 }
0x170b   :  { %1033 = vrot.lane.b32.xlu1 %v1031_v36, %s1405_s15 }
0x177d   :  { %v1034_v4 = vpop.permute.xlu1 %1033 }
0x177e   :  { %v1036_v39 = vadd.f32 %v1034_v4, %v1026_v38 }
0x1780   :  { %1355 = vtanh.f32 %v1036_v39 }
0x178d   :  { %v1356_v42 = vpop.eup %1355 }
0x178e   :  { %1039 = vrot.lane.b32.xlu0 %v1356_v42, %s1404_s1 }
0x1800   :  { %v1040_v43 = vpop.permute.xlu0 %1039 }
0x1801   :  { %v1042_v44 = vmul.f32 %v1354_v34, %v1040_v43 }
0x1803   :  { %v1043_v45 = vpack.c.bf16 %v1042_v44, %v1042_v44 }
0x1805   :  { %1056 = vrot.lane.b32.xlu1 %v1043_v45, %s1405_s15 }
0x1877   :  { %v1057_v46 = vpop.permute.xlu1 %1056 }
0x1878   :  { %1198 = vmatmul.mubr.msk.bf16.vlgmr.msra.gmra.mxu1 %vm197_vm2, %v1057_v46 }
0x1938   :  { %v1107_v48 = vpop.f32.mrf.mxu1 }
0x1939   :  { %v1108_v16 = vadd.f32 %v1171_v47, %v1107_v48 }
0x193a   :  { %v1199_v49 = vpop.f32.mrf.mxu1 }
0x193b   :  { %1113 = vst [vmem:[#allocation5] sm:$0xff] %v1108_v16 }
0x193c   :  { %v1110_v50 = vpop.f32.mrf.mxu1 }
0x193d   :  { %1388 = shalt.err (!%p1385_p9)
}
0x193e   :  { %1123 = dma.vmem_to_hbm [thread:$0]  %s1121_s26, 128, %s1716_s7, [#allocation4]   ;;  %v1200_v51 = vpop.f32.mrf.mxu1 }
0x193f   :  { %1399 = dma.done.wait [#allocation4], 128  }
0x1940   :  { %1400 = vsyncadd [#allocation4], 4294967168 }
0x1941   :  { %1127 = vsyncpa [#allocation3], 1 }
0x1942   :  { %1128 = vsyncpa [#allocation4], 1 }

</bundles_post_ra>
